<compile_context>
chip_gen: v6e
topology: v6e:2x2x1
jax: 0.10.0
libtpu: 0.0.40
codegen_flags: <defaults>
</compile_context>

<pallas_src>
import jax
import jax.numpy as jnp
from jax.experimental import pallas as pl
from jax.experimental.pallas import tpu as pltpu

# ----- config (mirrors the PyTorch `config` class) -----
TEXT_HIDDEN = 768       # bert-base-uncased hidden size
IMG_HIDDEN = 2048       # resnet50 fc.in_features
MIDDLE = 64             # config.middle_hidden_size
OUT_HIDDEN = 128        # config.out_hidden_size
NUM_LABELS = 3          # config.num_labels
LOSS_WEIGHT = [1.0, 5.78, 2.03]


def _fused_head_kernel(
    text_ref, img_ref, labels_ref,
    wt_ref, wi_ref, bf_ref,        # fused trans:  [768,128] bf16, [2048,128] bf16, [1,128] f32
    w1_ref, b1_ref,                # block-diag classifier L1: [128,256] bf16, [1,256] f32
    wt2_ref, bt2_ref,              # text classifier L2: [128,3] bf16, [1,3] f32
    wi2_ref, bi2_ref,              # img  classifier L2: [128,3] bf16, [1,3] f32
    pred_ref, nll_ref,
):
    f32 = jnp.float32
    bf16 = jnp.bfloat16

    def softmax_rows(x):
        m = jnp.max(x, axis=1, keepdims=True)
        e = jnp.exp(x - m)
        # exact reciprocal (approx=True skipped: keeps parity with the f32 reference)
        return e * pl.reciprocal(jnp.sum(e, axis=1, keepdims=True), approx=False)

    # ---- fused trans projections (Dropout is identity in eval) ----
    # in-kernel bf16 cast (features streamed from HBM as f32, no wrapper pre-pass).
    feat = jnp.maximum(
        jnp.dot(text_ref[...].astype(bf16), wt_ref[...], preferred_element_type=f32)
        + jnp.dot(img_ref[...].astype(bf16), wi_ref[...], preferred_element_type=f32)
        + bf_ref[...], 0.0)                                   # [TILE_B, 128]  = [text | img]

    # ---- block-diagonal classifier layer 1: Linear -> ReLU (both towers at once) ----
    h = jnp.maximum(
        jnp.dot(feat.astype(bf16), w1_ref[...], preferred_element_type=f32)
        + b1_ref[...], 0.0)                                   # [TILE_B, 256] = [text_h | img_h]

    # ---- classifier layer 2 (separate; only native 128-lane slices of h) ----
    text_logits = (jnp.dot(h[:, :OUT_HIDDEN].astype(bf16), wt2_ref[...],
                           preferred_element_type=f32) + bt2_ref[...])
    img_logits = (jnp.dot(h[:, OUT_HIDDEN:].astype(bf16), wi2_ref[...],
                          preferred_element_type=f32) + bi2_ref[...])

    text_prob = softmax_rows(text_logits)
    img_prob = softmax_rows(img_logits)

    # ---- fusion: softmax(text_prob + img_prob) ----
    prob_vec = softmax_rows(text_prob + img_prob)             # [TILE_B, 3] f32

    # ---- argmax over classes (lowest index on ties, like torch.argmax) ----
    ids = jax.lax.broadcasted_iota(jnp.int32, prob_vec.shape, 1)
    maxv = jnp.max(prob_vec, axis=1, keepdims=True)
    big = jnp.where(prob_vec == maxv, ids, jnp.int32(NUM_LABELS))
    pred_ref[...] = jnp.min(big, axis=1, keepdims=True)       # [TILE_B, 1] int32

    # ---- CrossEntropyLoss(prob_vec, labels): per-row unweighted NLL only ----
    # (PyTorch applies log_softmax on top of prob_vec, as in the reference code.)
    m = jnp.max(prob_vec, axis=1, keepdims=True)
    lse = m + jnp.log(jnp.sum(jnp.exp(prob_vec - m), axis=1, keepdims=True))
    logp = prob_vec - lse                                     # [TILE_B, 3]

    onehot = ids == labels_ref[...]                           # [TILE_B, 3] bool
    nll_ref[...] = jnp.sum(jnp.where(onehot, -logp, 0.0), axis=1, keepdims=True)


def prepare_head_params(params):
    """One-time weight preparation: bf16 casts + trans/classifier-L1 fusion.

    Adding exact zeros in the padded / off-diagonal blocks keeps the result
    bit-identical to the unfused bf16-matmul / f32-accumulate computation.
    """
    (class_w, wt, bt, wi, bi, wtc1, btc1, wtc2, btc2,
     wic1, bic1, wic2, bic2) = params
    f32, bf16 = jnp.float32, jnp.bfloat16

    # trans: place text projection into cols 0:64, image projection into cols 64:128
    wt_pad = jnp.zeros((TEXT_HIDDEN, 2 * MIDDLE), f32).at[:, :MIDDLE].set(wt).astype(bf16)
    wi_pad = jnp.zeros((IMG_HIDDEN, 2 * MIDDLE), f32).at[:, MIDDLE:].set(wi).astype(bf16)
    b_feat = jnp.concatenate([bt, bi], axis=1).astype(f32)            # [1, 128]

    # classifier layer 1: block-diagonal [128, 256]
    w1f = (jnp.zeros((2 * MIDDLE, 2 * OUT_HIDDEN), f32)
           .at[:MIDDLE, :OUT_HIDDEN].set(wtc1)
           .at[MIDDLE:, OUT_HIDDEN:].set(wic1)).astype(bf16)
    b1f = jnp.concatenate([btc1, bic1], axis=1).astype(f32)           # [1, 256]

    return (class_w.reshape(-1).astype(f32),
            wt_pad, wi_pad, b_feat, w1f, b1f,
            wtc2.astype(bf16), btc2.astype(f32),
            wic2.astype(bf16), bic2.astype(f32))


def fused_head(text_pooler, img_feat, labels, prepared):
    (class_w_flat, wt_pad, wi_pad, b_feat, w1f, b1f,
     wtc2_b, btc2, wic2_b, bic2) = prepared
    B = text_pooler.shape[0]

    # Batch tile: big enough to amortize ~0.35us/step grid overhead, split into >=2
    # tiles whenever possible (v7x has 2 TensorCores), capped at 512 rows so the
    # double-buffered f32 feature stream stays well inside a v7x-safe 32 MiB VMEM budget.
    # (On v6e/v5e with 128 MiB VMEM the cap could be raised to 1024-2048.)
    def round8(x):
        return max(8, ((x + 7) // 8) * 8)

    if B <= 16:
        tile_b = round8(B)
    else:
        tile_b = min(512, round8(pl.cdiv(B, 2)))
    n_tiles = pl.cdiv(B, tile_b)

    labels2 = labels.reshape(B, 1).astype(jnp.int32)

    def batch_spec(cols):
        return pl.BlockSpec((tile_b, cols), lambda i: (i, 0))

    def const_spec(arr):
        # full-array block, constant block index -> DMA'd once, VMEM-resident across tiles
        return pl.BlockSpec(arr.shape, lambda i: (0, 0))

    in_specs = [
        batch_spec(TEXT_HIDDEN),
        batch_spec(IMG_HIDDEN),
        batch_spec(1),
        const_spec(wt_pad), const_spec(wi_pad), const_spec(b_feat),
        const_spec(w1f), const_spec(b1f),
        const_spec(wtc2_b), const_spec(btc2), const_spec(wic2_b), const_spec(bic2),
    ]
    out_specs = (
        pl.BlockSpec((tile_b, 1), lambda i: (i, 0)),
        pl.BlockSpec((tile_b, 1), lambda i: (i, 0)),
    )
    out_shape = (
        jax.ShapeDtypeStruct((B, 1), jnp.int32),
        jax.ShapeDtypeStruct((B, 1), jnp.float32),
    )

    matmul_flops = 2 * B * (TEXT_HIDDEN * 2 * MIDDLE + IMG_HIDDEN * 2 * MIDDLE
                            + 2 * MIDDLE * 2 * OUT_HIDDEN
                            + 2 * OUT_HIDDEN * NUM_LABELS)
    weight_bytes = 2 * (wt_pad.size + wi_pad.size + w1f.size + wtc2_b.size + wic2_b.size) \
        + 4 * (b_feat.size + b1f.size + btc2.size + bic2.size)
    io_bytes = B * ((TEXT_HIDDEN + IMG_HIDDEN) * 4 + 4 + 8)
    cost = pl.CostEstimate(
        flops=matmul_flops,
        transcendentals=13 * B,
        bytes_accessed=weight_bytes + io_bytes,
    )

    pred, nll = pl.pallas_call(
        _fused_head_kernel,
        out_shape=out_shape,
        grid=(n_tiles,),
        in_specs=in_specs,
        out_specs=out_specs,
        compiler_params=pltpu.CompilerParams(
            dimension_semantics=("parallel",),
            vmem_limit_bytes=32 * 1024 * 1024,
        ),
        cost_estimate=cost,
    )(text_pooler, img_feat, labels2,
      wt_pad, wi_pad, b_feat, w1f, b1f,
      wtc2_b, btc2, wic2_b, bic2)

    # Weighted-mean reduction in the wrapper: per-row weight is just class_w[label],
    # so the kernel only emits the unweighted NLL (one fewer narrow output stream).
    w = class_w_flat[labels]
    loss = jnp.sum(w * nll[:, 0]) / jnp.sum(w)
    return pred[:, 0], loss


def reference_head(text_pooler, img_feat, labels, params):
    """Pure-JAX reference emulating the kernel's bf16-matmul / f32-accumulate numerics."""
    (class_w, wt, bt, wi, bi, wtc1, btc1, wtc2, btc2,
     wic1, bic1, wic2, bic2) = params
    bf16, f32 = jnp.bfloat16, jnp.float32

    def mm(x, w):
        return jnp.dot(x.astype(bf16), w.astype(bf16), preferred_element_type=f32)

    sm = lambda x: jax.nn.softmax(x, axis=1)
    tf = jax.nn.relu(mm(text_pooler, wt) + bt)
    imf = jax.nn.relu(mm(img_feat, wi) + bi)
    tp = sm(mm(jax.nn.relu(mm(tf, wtc1) + btc1), wtc2) + btc2)
    ip = sm(mm(jax.nn.relu(mm(imf, wic1) + bic1), wic2) + bic2)
    prob = sm(tp + ip)
    pred = jnp.argmax(prob, axis=1)
    logp = jax.nn.log_softmax(prob, axis=1)
    w = class_w[0][labels]
    nll = -logp[jnp.arange(prob.shape[0]), labels]
    loss = jnp.sum(w * nll) / jnp.sum(w)
    return pred, loss


if __name__ == "__main__":
    key = jax.random.PRNGKey(0)
    ks = jax.random.split(key, 16)

    B = 8
    text_pooler = jax.random.normal(ks[0], (B, TEXT_HIDDEN), jnp.float32)
    img_feat = jax.random.normal(ks[1], (B, IMG_HIDDEN), jnp.float32)
    labels = jax.random.randint(ks[2], (B,), 0, NUM_LABELS, jnp.int32)

    def lin(k, fan_in, fan_out):
        kw, kb = jax.random.split(k)
        bound = 1.0 / jnp.sqrt(fan_in)
        w = jax.random.uniform(kw, (fan_in, fan_out), jnp.float32, -bound, bound)
        b = jax.random.uniform(kb, (1, fan_out), jnp.float32, -bound, bound)
        return w, b

    wt, bt = lin(ks[3], TEXT_HIDDEN, MIDDLE)
    wi, bi = lin(ks[4], IMG_HIDDEN, MIDDLE)
    wtc1, btc1 = lin(ks[5], MIDDLE, OUT_HIDDEN)
    wtc2, btc2 = lin(ks[6], OUT_HIDDEN, NUM_LABELS)
    wic1, bic1 = lin(ks[7], MIDDLE, OUT_HIDDEN)
    wic2, bic2 = lin(ks[8], OUT_HIDDEN, NUM_LABELS)
    class_w = jnp.array([LOSS_WEIGHT], dtype=jnp.float32)    # [1, 3]

    params = (class_w, wt, bt, wi, bi, wtc1, btc1, wtc2, btc2,
              wic1, bic1, wic2, bic2)

    # one-time weight preparation (bf16 cast + fusion), reused across calls
    prepared = prepare_head_params(params)

    pred, loss = fused_head(text_pooler, img_feat, labels, prepared)
    jax.block_until_ready((pred, loss))

    ref_pred, ref_loss = reference_head(text_pooler, img_feat, labels, params)
    assert pred.shape == (B,)
    assert jnp.all(pred == ref_pred), (pred, ref_pred)
    # bf16 matmuls -> loosen tolerance vs f32-exact comparison
    assert jnp.allclose(loss, ref_loss, atol=1e-3, rtol=1e-3), (loss, ref_loss)

    print("KERNEL_OK")
</pallas_src>

<mosaic_0001>
module attributes {stable_mosaic.version = 11 : i64} {
  func.func @_fused_head_kernel(%arg0: i32, %arg1: memref<8x768xf32, #tpu.memory_space<vmem>>, %arg2: memref<8x2048xf32, #tpu.memory_space<vmem>>, %arg3: memref<8x1xi32, #tpu.memory_space<vmem>>, %arg4: memref<768x128xbf16, #tpu.memory_space<vmem>>, %arg5: memref<2048x128xbf16, #tpu.memory_space<vmem>>, %arg6: memref<1x128xf32, #tpu.memory_space<vmem>>, %arg7: memref<128x256xbf16, #tpu.memory_space<vmem>>, %arg8: memref<1x256xf32, #tpu.memory_space<vmem>>, %arg9: memref<128x3xbf16, #tpu.memory_space<vmem>>, %arg10: memref<1x3xf32, #tpu.memory_space<vmem>>, %arg11: memref<128x3xbf16, #tpu.memory_space<vmem>>, %arg12: memref<1x3xf32, #tpu.memory_space<vmem>>, %arg13: memref<8x1xi32, #tpu.memory_space<vmem>>, %arg14: memref<8x1xf32, #tpu.memory_space<vmem>>) attributes {dimension_semantics = [#tpu.dimension_semantics<parallel>], iteration_bounds = array<i64: 1>, scalar_prefetch = 0 : i64, scratch_operands = 0 : i64, tpu.core_type = #tpu.core_type<tc>, window_params = [{transform_indices = @transform_0, window_bounds = array<i64: 8, 768>}, {transform_indices = @transform_1, window_bounds = array<i64: 8, 2048>}, {transform_indices = @transform_2, window_bounds = array<i64: 8, 1>}, {pipeline_mode = #tpu.pipeline_mode<synchronous>, transform_indices = @transform_3, window_bounds = array<i64: 768, 128>}, {pipeline_mode = #tpu.pipeline_mode<synchronous>, transform_indices = @transform_4, window_bounds = array<i64: 2048, 128>}, {pipeline_mode = #tpu.pipeline_mode<synchronous>, transform_indices = @transform_5, window_bounds = array<i64: 1, 128>}, {pipeline_mode = #tpu.pipeline_mode<synchronous>, transform_indices = @transform_6, window_bounds = array<i64: 128, 256>}, {pipeline_mode = #tpu.pipeline_mode<synchronous>, transform_indices = @transform_7, window_bounds = array<i64: 1, 256>}, {pipeline_mode = #tpu.pipeline_mode<synchronous>, transform_indices = @transform_8, window_bounds = array<i64: 128, 3>}, {pipeline_mode = #tpu.pipeline_mode<synchronous>, transform_indices = @transform_9, window_bounds = array<i64: 1, 3>}, {pipeline_mode = #tpu.pipeline_mode<synchronous>, transform_indices = @transform_10, window_bounds = array<i64: 128, 3>}, {pipeline_mode = #tpu.pipeline_mode<synchronous>, transform_indices = @transform_11, window_bounds = array<i64: 1, 3>}, {transform_indices = @transform_12, window_bounds = array<i64: 8, 1>}, {transform_indices = @transform_13, window_bounds = array<i64: 8, 1>}]} {
    %c0 = arith.constant 0 : index
    %c0_0 = arith.constant 0 : index
    %0 = vector.load %arg1[%c0, %c0_0] : memref<8x768xf32, #tpu.memory_space<vmem>>, vector<8x768xf32>
    %1 = arith.truncf %0 : vector<8x768xf32> to vector<8x768xbf16>
    %c0_1 = arith.constant 0 : index
    %c0_2 = arith.constant 0 : index
    %2 = vector.load %arg4[%c0_1, %c0_2] : memref<768x128xbf16, #tpu.memory_space<vmem>>, vector<768x128xbf16>
    %cst = arith.constant dense<0.000000e+00> : vector<8x128xf32>
    %3 = tpu.matmul %1, %2, %cst {dimension_numbers = #tpu.dot_dimension_numbers<[1], [0], [0], [1], [0, 0, 1, 1], [], []>} : vector<8x768xbf16>, vector<768x128xbf16>, vector<8x128xf32> -> vector<8x128xf32>
    %c0_3 = arith.constant 0 : index
    %c0_4 = arith.constant 0 : index
    %4 = vector.load %arg2[%c0_3, %c0_4] : memref<8x2048xf32, #tpu.memory_space<vmem>>, vector<8x2048xf32>
    %5 = arith.truncf %4 : vector<8x2048xf32> to vector<8x2048xbf16>
    %c0_5 = arith.constant 0 : index
    %c0_6 = arith.constant 0 : index
    %6 = vector.load %arg5[%c0_5, %c0_6] : memref<2048x128xbf16, #tpu.memory_space<vmem>>, vector<2048x128xbf16>
    %cst_7 = arith.constant dense<0.000000e+00> : vector<8x128xf32>
    %7 = tpu.matmul %5, %6, %cst_7 {dimension_numbers = #tpu.dot_dimension_numbers<[1], [0], [0], [1], [0, 0, 1, 1], [], []>} : vector<8x2048xbf16>, vector<2048x128xbf16>, vector<8x128xf32> -> vector<8x128xf32>
    %8 = arith.addf %3, %7 : vector<8x128xf32>
    %c0_8 = arith.constant 0 : index
    %c0_9 = arith.constant 0 : index
    %9 = vector.load %arg6[%c0_8, %c0_9] : memref<1x128xf32, #tpu.memory_space<vmem>>, vector<1x128xf32>
    %10 = vector.broadcast %9 : vector<1x128xf32> to vector<8x128xf32>
    %11 = arith.addf %8, %10 : vector<8x128xf32>
    %cst_10 = arith.constant 0.000000e+00 : f32
    %12 = vector.broadcast %cst_10 : f32 to vector<8x128xf32>
    %13 = arith.maximumf %11, %12 : vector<8x128xf32>
    %14 = arith.truncf %13 : vector<8x128xf32> to vector<8x128xbf16>
    %c0_11 = arith.constant 0 : index
    %c0_12 = arith.constant 0 : index
    %15 = vector.load %arg7[%c0_11, %c0_12] : memref<128x256xbf16, #tpu.memory_space<vmem>>, vector<128x256xbf16>
    %cst_13 = arith.constant dense<0.000000e+00> : vector<8x256xf32>
    %16 = tpu.matmul %14, %15, %cst_13 {dimension_numbers = #tpu.dot_dimension_numbers<[1], [0], [0], [1], [0, 0, 1, 1], [], []>} : vector<8x128xbf16>, vector<128x256xbf16>, vector<8x256xf32> -> vector<8x256xf32>
    %c0_14 = arith.constant 0 : index
    %c0_15 = arith.constant 0 : index
    %17 = vector.load %arg8[%c0_14, %c0_15] : memref<1x256xf32, #tpu.memory_space<vmem>>, vector<1x256xf32>
    %18 = vector.broadcast %17 : vector<1x256xf32> to vector<8x256xf32>
    %19 = arith.addf %16, %18 : vector<8x256xf32>
    %cst_16 = arith.constant 0.000000e+00 : f32
    %20 = vector.broadcast %cst_16 : f32 to vector<8x256xf32>
    %21 = arith.maximumf %19, %20 : vector<8x256xf32>
    %22 = vector.extract_strided_slice %21 {offsets = [0, 0], sizes = [8, 128], strides = [1, 1]} : vector<8x256xf32> to vector<8x128xf32>
    %23 = arith.truncf %22 : vector<8x128xf32> to vector<8x128xbf16>
    %c0_17 = arith.constant 0 : index
    %c0_18 = arith.constant 0 : index
    %24 = vector.load %arg9[%c0_17, %c0_18] : memref<128x3xbf16, #tpu.memory_space<vmem>>, vector<128x3xbf16>
    %cst_19 = arith.constant dense<0.000000e+00> : vector<8x3xf32>
    %25 = tpu.matmul %23, %24, %cst_19 {dimension_numbers = #tpu.dot_dimension_numbers<[1], [0], [0], [1], [0, 0, 1, 1], [], []>} : vector<8x128xbf16>, vector<128x3xbf16>, vector<8x3xf32> -> vector<8x3xf32>
    %c0_20 = arith.constant 0 : index
    %c0_21 = arith.constant 0 : index
    %26 = vector.load %arg10[%c0_20, %c0_21] : memref<1x3xf32, #tpu.memory_space<vmem>>, vector<1x3xf32>
    %27 = vector.broadcast %26 : vector<1x3xf32> to vector<8x3xf32>
    %28 = arith.addf %25, %27 : vector<8x3xf32>
    %29 = vector.extract_strided_slice %21 {offsets = [0, 128], sizes = [8, 128], strides = [1, 1]} : vector<8x256xf32> to vector<8x128xf32>
    %30 = arith.truncf %29 : vector<8x128xf32> to vector<8x128xbf16>
    %c0_22 = arith.constant 0 : index
    %c0_23 = arith.constant 0 : index
    %31 = vector.load %arg11[%c0_22, %c0_23] : memref<128x3xbf16, #tpu.memory_space<vmem>>, vector<128x3xbf16>
    %cst_24 = arith.constant dense<0.000000e+00> : vector<8x3xf32>
    %32 = tpu.matmul %30, %31, %cst_24 {dimension_numbers = #tpu.dot_dimension_numbers<[1], [0], [0], [1], [0, 0, 1, 1], [], []>} : vector<8x128xbf16>, vector<128x3xbf16>, vector<8x3xf32> -> vector<8x3xf32>
    %c0_25 = arith.constant 0 : index
    %c0_26 = arith.constant 0 : index
    %33 = vector.load %arg12[%c0_25, %c0_26] : memref<1x3xf32, #tpu.memory_space<vmem>>, vector<1x3xf32>
    %34 = vector.broadcast %33 : vector<1x3xf32> to vector<8x3xf32>
    %35 = arith.addf %32, %34 : vector<8x3xf32>
    %cst_27 = arith.constant dense<0xFF800000> : vector<8xf32>
    %36 = vector.multi_reduction <maximumf>, %28, %cst_27 [1] : vector<8x3xf32> to vector<8xf32>
    %37 = vector.shape_cast %36 : vector<8xf32> to vector<8x1xf32>
    %38 = vector.broadcast %37 : vector<8x1xf32> to vector<8x3xf32>
    %39 = arith.subf %28, %38 : vector<8x3xf32>
    %40 = math.exp %39 : vector<8x3xf32>
    %cst_28 = arith.constant dense<0.000000e+00> : vector<8xf32>
    %41 = vector.multi_reduction <add>, %40, %cst_28 [1] : vector<8x3xf32> to vector<8xf32>
    %42 = vector.shape_cast %41 : vector<8xf32> to vector<8x1xf32>
    %43 = tpu.reciprocal %42 : vector<8x1xf32> -> vector<8x1xf32>
    %44 = vector.broadcast %43 : vector<8x1xf32> to vector<8x3xf32>
    %45 = arith.mulf %40, %44 : vector<8x3xf32>
    %cst_29 = arith.constant dense<0xFF800000> : vector<8xf32>
    %46 = vector.multi_reduction <maximumf>, %35, %cst_29 [1] : vector<8x3xf32> to vector<8xf32>
    %47 = vector.shape_cast %46 : vector<8xf32> to vector<8x1xf32>
    %48 = vector.broadcast %47 : vector<8x1xf32> to vector<8x3xf32>
    %49 = arith.subf %35, %48 : vector<8x3xf32>
    %50 = math.exp %49 : vector<8x3xf32>
    %cst_30 = arith.constant dense<0.000000e+00> : vector<8xf32>
    %51 = vector.multi_reduction <add>, %50, %cst_30 [1] : vector<8x3xf32> to vector<8xf32>
    %52 = vector.shape_cast %51 : vector<8xf32> to vector<8x1xf32>
    %53 = tpu.reciprocal %52 : vector<8x1xf32> -> vector<8x1xf32>
    %54 = vector.broadcast %53 : vector<8x1xf32> to vector<8x3xf32>
    %55 = arith.mulf %50, %54 : vector<8x3xf32>
    %56 = arith.addf %45, %55 : vector<8x3xf32>
    %cst_31 = arith.constant dense<0xFF800000> : vector<8xf32>
    %57 = vector.multi_reduction <maximumf>, %56, %cst_31 [1] : vector<8x3xf32> to vector<8xf32>
    %58 = vector.shape_cast %57 : vector<8xf32> to vector<8x1xf32>
    %59 = vector.broadcast %58 : vector<8x1xf32> to vector<8x3xf32>
    %60 = arith.subf %56, %59 : vector<8x3xf32>
    %61 = math.exp %60 : vector<8x3xf32>
    %cst_32 = arith.constant dense<0.000000e+00> : vector<8xf32>
    %62 = vector.multi_reduction <add>, %61, %cst_32 [1] : vector<8x3xf32> to vector<8xf32>
    %63 = vector.shape_cast %62 : vector<8xf32> to vector<8x1xf32>
    %64 = tpu.reciprocal %63 : vector<8x1xf32> -> vector<8x1xf32>
    %65 = vector.broadcast %64 : vector<8x1xf32> to vector<8x3xf32>
    %66 = arith.mulf %61, %65 : vector<8x3xf32>
    %67 = tpu.iota {dimensions = array<i32: 1>} : vector<8x3xi32>
    %cst_33 = arith.constant dense<0xFF800000> : vector<8xf32>
    %68 = vector.multi_reduction <maximumf>, %66, %cst_33 [1] : vector<8x3xf32> to vector<8xf32>
    %69 = vector.shape_cast %68 : vector<8xf32> to vector<8x1xf32>
    %70 = vector.broadcast %69 : vector<8x1xf32> to vector<8x3xf32>
    %71 = arith.cmpf oeq, %66, %70 : vector<8x3xf32>
    %c3_i32 = arith.constant 3 : i32
    %72 = vector.broadcast %c3_i32 : i32 to vector<8x3xi32>
    %73 = arith.select %71, %67, %72 : vector<8x3xi1>, vector<8x3xi32>
    %cst_34 = arith.constant dense<2147483647> : vector<8xi32>
    %74 = vector.multi_reduction <minsi>, %73, %cst_34 [1] : vector<8x3xi32> to vector<8xi32>
    %75 = vector.shape_cast %74 : vector<8xi32> to vector<8x1xi32>
    %c0_35 = arith.constant 0 : index
    %c0_36 = arith.constant 0 : index
    %76 = vector.load %arg13[%c0_35, %c0_36] : memref<8x1xi32, #tpu.memory_space<vmem>>, vector<8x1xi32>
    tpu.vector_store %arg13[%c0_35, %c0_36], %75 {strides = array<i32>} : memref<8x1xi32, #tpu.memory_space<vmem>>, vector<8x1xi32>,
    %cst_37 = arith.constant dense<0xFF800000> : vector<8xf32>
    %77 = vector.multi_reduction <maximumf>, %66, %cst_37 [1] : vector<8x3xf32> to vector<8xf32>
    %78 = vector.shape_cast %77 : vector<8xf32> to vector<8x1xf32>
    %79 = vector.broadcast %78 : vector<8x1xf32> to vector<8x3xf32>
    %80 = arith.subf %66, %79 : vector<8x3xf32>
    %81 = math.exp %80 : vector<8x3xf32>
    %cst_38 = arith.constant dense<0.000000e+00> : vector<8xf32>
    %82 = vector.multi_reduction <add>, %81, %cst_38 [1] : vector<8x3xf32> to vector<8xf32>
    %83 = vector.shape_cast %82 : vector<8xf32> to vector<8x1xf32>
    %84 = math.log %83 : vector<8x1xf32>
    %85 = arith.addf %78, %84 : vector<8x1xf32>
    %86 = vector.broadcast %85 : vector<8x1xf32> to vector<8x3xf32>
    %87 = arith.subf %66, %86 : vector<8x3xf32>
    %c0_39 = arith.constant 0 : index
    %c0_40 = arith.constant 0 : index
    %88 = vector.load %arg3[%c0_39, %c0_40] : memref<8x1xi32, #tpu.memory_space<vmem>>, vector<8x1xi32>
    %89 = vector.broadcast %88 : vector<8x1xi32> to vector<8x3xi32>
    %90 = arith.cmpi eq, %67, %89 : vector<8x3xi32>
    %cst_41 = arith.constant 0.000000e+00 : f32
    %91 = vector.broadcast %cst_41 : f32 to vector<8x3xf32>
    %92 = arith.subf %91, %87 : vector<8x3xf32>
    %cst_42 = arith.constant 0.000000e+00 : f32
    %93 = vector.broadcast %cst_42 : f32 to vector<8x3xf32>
    %94 = arith.select %90, %92, %93 : vector<8x3xi1>, vector<8x3xf32>
    %cst_43 = arith.constant dense<0.000000e+00> : vector<8xf32>
    %95 = vector.multi_reduction <add>, %94, %cst_43 [1] : vector<8x3xf32> to vector<8xf32>
    %96 = vector.shape_cast %95 : vector<8xf32> to vector<8x1xf32>
    %c0_44 = arith.constant 0 : index
    %c0_45 = arith.constant 0 : index
    %97 = vector.load %arg14[%c0_44, %c0_45] : memref<8x1xf32, #tpu.memory_space<vmem>>, vector<8x1xf32>
    tpu.vector_store %arg14[%c0_44, %c0_45], %96 {strides = array<i32>} : memref<8x1xf32, #tpu.memory_space<vmem>>, vector<8x1xf32>,
    return
  }
  func.func @transform_0(%arg0: i32) -> (i32, i32) {
    %c0_i32 = arith.constant 0 : i32
    %c0_i32_0 = arith.constant 0 : i32
    return %arg0, %c0_i32 : i32, i32
  }
  func.func @transform_1(%arg0: i32) -> (i32, i32) {
    %c0_i32 = arith.constant 0 : i32
    %c0_i32_0 = arith.constant 0 : i32
    return %arg0, %c0_i32 : i32, i32
  }
  func.func @transform_2(%arg0: i32) -> (i32, i32) {
    %c0_i32 = arith.constant 0 : i32
    %c0_i32_0 = arith.constant 0 : i32
    return %arg0, %c0_i32 : i32, i32
  }
  func.func @transform_3(%arg0: i32) -> (i32, i32) {
    %c0_i32 = arith.constant 0 : i32
    %c0_i32_0 = arith.constant 0 : i32
    %c0_i32_1 = arith.constant 0 : i32
    return %c0_i32, %c0_i32_0 : i32, i32
  }
  func.func @transform_4(%arg0: i32) -> (i32, i32) {
    %c0_i32 = arith.constant 0 : i32
    %c0_i32_0 = arith.constant 0 : i32
    %c0_i32_1 = arith.constant 0 : i32
    return %c0_i32, %c0_i32_0 : i32, i32
  }
  func.func @transform_5(%arg0: i32) -> (i32, i32) {
    %c0_i32 = arith.constant 0 : i32
    %c0_i32_0 = arith.constant 0 : i32
    %c0_i32_1 = arith.constant 0 : i32
    return %c0_i32, %c0_i32_0 : i32, i32
  }
  func.func @transform_6(%arg0: i32) -> (i32, i32) {
    %c0_i32 = arith.constant 0 : i32
    %c0_i32_0 = arith.constant 0 : i32
    %c0_i32_1 = arith.constant 0 : i32
    return %c0_i32, %c0_i32_0 : i32, i32
  }
  func.func @transform_7(%arg0: i32) -> (i32, i32) {
    %c0_i32 = arith.constant 0 : i32
    %c0_i32_0 = arith.constant 0 : i32
    %c0_i32_1 = arith.constant 0 : i32
    return %c0_i32, %c0_i32_0 : i32, i32
  }
  func.func @transform_8(%arg0: i32) -> (i32, i32) {
    %c0_i32 = arith.constant 0 : i32
    %c0_i32_0 = arith.constant 0 : i32
    %c0_i32_1 = arith.constant 0 : i32
    return %c0_i32, %c0_i32_0 : i32, i32
  }
  func.func @transform_9(%arg0: i32) -> (i32, i32) {
    %c0_i32 = arith.constant 0 : i32
    %c0_i32_0 = arith.constant 0 : i32
    %c0_i32_1 = arith.constant 0 : i32
    return %c0_i32, %c0_i32_0 : i32, i32
  }
  func.func @transform_10(%arg0: i32) -> (i32, i32) {
    %c0_i32 = arith.constant 0 : i32
    %c0_i32_0 = arith.constant 0 : i32
    %c0_i32_1 = arith.constant 0 : i32
    return %c0_i32, %c0_i32_0 : i32, i32
  }
  func.func @transform_11(%arg0: i32) -> (i32, i32) {
    %c0_i32 = arith.constant 0 : i32
    %c0_i32_0 = arith.constant 0 : i32
    %c0_i32_1 = arith.constant 0 : i32
    return %c0_i32, %c0_i32_0 : i32, i32
  }
  func.func @transform_12(%arg0: i32) -> (i32, i32) {
    %c0_i32 = arith.constant 0 : i32
    %c0_i32_0 = arith.constant 0 : i32
    return %arg0, %c0_i32 : i32, i32
  }
  func.func @transform_13(%arg0: i32) -> (i32, i32) {
    %c0_i32 = arith.constant 0 : i32
    %c0_i32_0 = arith.constant 0 : i32
    return %arg0, %c0_i32 : i32, i32
  }
}

</mosaic_0001>

<bundles_post_ra>
// kernel: tpu_custom_call.1
= control target key start
LH: loop header
LB: loop body
LE: loop exit
PB: predicated region body
PF: predicated region fallthrough
CT: control target
= control target key end

     0   :  { %19 = vsyncpa [#allocation3], 0  ;;  %s3547_s0 = inlined_call_operand.hbm [shape: f32[8,768], index: 0, kind: input, shape index: {}]   ;;  %s3548_s1 = inlined_call_operand.vmem [shape: f32[8,2048], index: 1, kind: input, shape index: {}]   ;;  %s3549_s2 = inlined_call_operand.vmem [shape: s32[8,1], index: 2, kind: input, shape index: {}]   ;;  %s3550_s3 = inlined_call_operand.hbm [shape: bf16[768,128], index: 3, kind: input, shape index: {}]   ;;  %s3551_s4 = inlined_call_operand.hbm [shape: bf16[2048,128], index: 4, kind: input, shape index: {}]   ;;  %s3552_s5 = inlined_call_operand.vmem [shape: f32[1,128], index: 5, kind: input, shape index: {}]   ;;  %s3553_s6 = inlined_call_operand.hbm [shape: bf16[128,256], index: 6, kind: input, shape index: {}]   ;;  %s3554_s7 = inlined_call_operand.vmem [shape: f32[1,256], index: 7, kind: input, shape index: {}]   ;;  %s3555_s8 = inlined_call_operand.vmem [shape: bf16[128,3], index: 8, kind: input, shape index: {}]   ;;  %s3556_s9 = inlined_call_operand.vmem [shape: f32[1,3], index: 9, kind: input, shape index: {}]   ;;  %s3557_s10 = inlined_call_operand.vmem [shape: bf16[128,3], index: 10, kind: input, shape index: {}]   ;;  %s3558_s11 = inlined_call_operand.vmem [shape: f32[1,3], index: 11, kind: input, shape index: {}]   ;;  %s3559_s12 = inlined_call_operand.vmem [shape: s32[8,1], index: 12, kind: output, shape index: {0}]   ;;  %s3560_s13 = inlined_call_operand.vmem [shape: f32[8,1], index: 13, kind: output, shape index: {1}]  }
   0x1   :  { %20 = vsyncpa [#allocation5], 0 }
   0x2   :  { %21 = vsyncpa [#allocation8], 0  ;;  %s3307_s25 = smov [#allocation4]  }
   0x3   :  { %s41_s26 = sshll.u32 %s3307_s25, 4  ;;  %s42_s26 = int_to_ptr.vmem [resolvable:$true] %s41_s26 }
   0x4   :  { %s3229_s27 = scalar_lea.vmem %s42_s26, 6144  ;;  %p3234_p1 = scmp.lt.s32.totalorder %s42_s26, %s42_s26 }
   0x5   :  { %p3230_p0 = scmp.ne.s32.totalorder %s42_s26, %s3229_s27  ;;  %p3235_p2 = scmp.lt.s32.totalorder %s3229_s27, %s3229_s27 }
   0x7   :  { %p3236_p3 = por %p3235_p2, %p3234_p1 }
   0x9   :  { %p3237_p4 = pnand %p3236_p3, %p3230_p0 }
   0xb   :  { %3240 = shalt.err (!%p3237_p4)
}
   0xc   :  { %s3308_s28 = smov 64   ;;  %s3309_s29 = smov 4  }
   0xd   :  { %47 = dma.hbm_to_vmem [thread:$0]  %s3550_s3, 6144, %s42_s26, [#allocation5], %s3308_s28, %s3308_s28, %s3309_s29  }
   0xe   :  { %s3310_s15 = smov [#allocation2]   ;;  %s3311_s17 = smov [#allocation6]  }
   0xf   :  { %s28_s16 = sshll.u32 %s3310_s15, 4  ;;  %s53_s18 = sshll.u32 %s3311_s17, 4  ;;  %s29_s16 = int_to_ptr.vmem [resolvable:$true] %s28_s16  ;;  %s54_s18 = int_to_ptr.vmem [resolvable:$true] %s53_s18 }
  0x10   :  { %s3249_s19 = scalar_lea.vmem %s29_s16, 768  ;;  %p3254_p6 = scmp.lt.s32.totalorder %s29_s16, %s29_s16 }
  0x11   :  { %p3250_p5 = scmp.ne.s32.totalorder %s29_s16, %s3249_s19  ;;  %p3255_p7 = scmp.lt.s32.totalorder %s3249_s19, %s3249_s19 }
  0x13   :  { %p3256_p8 = por %p3255_p7, %p3254_p6 }
  0x15   :  { %p3257_p9 = pnand %p3256_p8, %p3250_p5 }
  0x17   :  { %3260 = shalt.err (!%p3257_p9)
}
  0x18   :  { %31 = dma.hbm_to_vmem [thread:$0]  %s3547_s0, 768, %s29_s16, [#allocation3]  }
  0x19   :  { %s3269_s22 = scalar_lea.vmem %s54_s18, 16384  ;;  %p3274_p11 = scmp.lt.s32.totalorder %s54_s18, %s54_s18 }
  0x1a   :  { %p3270_p10 = scmp.ne.s32.totalorder %s54_s18, %s3269_s22  ;;  %p3275_p12 = scmp.lt.s32.totalorder %s3269_s22, %s3269_s22 }
  0x1c   :  { %p3276_p13 = por %p3275_p12, %p3274_p11 }
  0x1e   :  { %p3277_p0 = pnand %p3276_p13, %p3270_p10 }
  0x20   :  { %3280 = shalt.err (!%p3277_p0)
}
  0x21   :  { %59 = dma.hbm_to_vmem [thread:$0]  %s3551_s4, 16384, %s54_s18, [#allocation5], %s3308_s28, %s3308_s28, %s3309_s29  }
  0x22   :  { %s3312_s24 = smov [#allocation7]  }
  0x23   :  { %s67_s25 = sshll.u32 %s3312_s24, 4  ;;  %s68_s25 = int_to_ptr.vmem [resolvable:$true] %s67_s25 }
  0x24   :  { %s3289_s26 = scalar_lea.vmem %s68_s25, 2048  ;;  %p3294_p2 = scmp.lt.s32.totalorder %s68_s25, %s68_s25 }
  0x25   :  { %p3290_p1 = scmp.ne.s32.totalorder %s68_s25, %s3289_s26  ;;  %p3295_p3 = scmp.lt.s32.totalorder %s3289_s26, %s3289_s26 }
  0x27   :  { %p3296_p4 = por %p3295_p3, %p3294_p2 }
  0x29   :  { %p3297_p5 = pnand %p3296_p4, %p3290_p1 }
  0x2b   :  { %3300 = shalt.err (!%p3297_p5)
}
  0x2c   :  { %s3313_s0 = smov 128   ;;  %s3314_s27 = smov 8  }
  0x2d   :  { %73 = dma.hbm_to_vmem [thread:$0]  %s3553_s6, 2048, %s68_s25, [#allocation8], %s3313_s0, %s3313_s0, %s3314_s27  }
  0x2e   :  { %3301 = dma.done.wait [#allocation3], 768  }
  0x2f   :  { %3302 = vsyncadd [#allocation3], 4294966528 }
  0x30   :  { %3303 = dma.done.wait [#allocation5], 22528  }
  0x31   :  { %3304 = vsyncadd [#allocation5], 4294944768 }
  0x32   :  { %3305 = dma.done.wait [#allocation8], 2048  }
  0x33   :  { %3306 = vsyncadd [#allocation8], 4294965248  ;;  %v2989_v0 = vld [vmem:[#allocation6 + $0x78] sm:$0xff]   ;;  %v2993_v4 = vld [vmem:[#allocation6 + $0x70] sm:$0xff]   ;;  %vm3317_vm0 = vmmov 0   ;;  %vm2374_vm1 = vcmask 23552  }
  0x34   :  { %v2990_v1 = vld [vmem:[#allocation6 + $0xf8] sm:$0xff]   ;;  %2676 = vmatprep.subr.bf16.mxu0 %v2989_v0  ;;  %v2994_v5 = vld [vmem:[#allocation6 + $0xf0] sm:$0xff]   ;;  %v2997_v8 = vld [vmem:[#allocation6 + $0x68] sm:$0xff]   ;;  %vm2431_vm5 = vcmask 7168  }
  0x35   :  { %v2991_v2 = vld [vmem:[#allocation6 + $0x38] sm:$0xff]   ;;  %2698 = vmatprep.subr.bf16.mxu1 %v2990_v1  ;;  %v2995_v6 = vld [vmem:[#allocation6 + $0x30] sm:$0xff]   ;;  %v2998_v9 = vld [vmem:[#allocation6 + $0xe8] sm:$0xff]  }
  0x36   :  { %v2992_v3 = vld [vmem:[#allocation6 + $0xb8] sm:$0xff]   ;;  %2677 = vmatpush3.bf16.msra.mxu0 %v2991_v2  ;;  %v2996_v7 = vld [vmem:[#allocation6 + $0xb0] sm:$0xff]   ;;  %v2999_v10 = vld [vmem:[#allocation6 + $0x28] sm:$0xff]  }
  0x37   :  { %2699 = vmatpush3.bf16.msra.mxu1 %v2992_v3  ;;  %2678 = vmatprep.subr.bf16.mxu0 %v2993_v4  ;;  %v3000_v11 = vld [vmem:[#allocation6 + $0xa8] sm:$0xff]   ;;  %v3001_v12 = vld [vmem:[#allocation6 + $0x60] sm:$0xff]   ;;  %v3005_v16 = vld [vmem:[#allocation6 + $0x58] sm:$0xff]  }
  0x38   :  { %2700 = vmatprep.subr.bf16.mxu1 %v2994_v5  ;;  %v3002_v13 = vld [vmem:[#allocation6 + $0xe0] sm:$0xff]   ;;  %v3006_v17 = vld [vmem:[#allocation6 + $0xd8] sm:$0xff]   ;;  %v3009_v20 = vld [vmem:[#allocation6 + $0x50] sm:$0xff]  }
  0x39   :  { %v3003_v14 = vld [vmem:[#allocation6 + $0x20] sm:$0xff]   ;;  %v3007_v18 = vld [vmem:[#allocation6 + $0x18] sm:$0xff]   ;;  %v3010_v21 = vld [vmem:[#allocation6 + $0xd0] sm:$0xff]  }
  0x3a   :  { %2679 = vmatpush3.bf16.msra.mxu0 %v2995_v6  ;;  %v3004_v15 = vld [vmem:[#allocation6 + $0xa0] sm:$0xff]   ;;  %v3008_v19 = vld [vmem:[#allocation6 + $0x98] sm:$0xff]   ;;  %v3011_v22 = vld [vmem:[#allocation6 + $0x10] sm:$0xff]  }
  0x3b   :  { %2701 = vmatpush3.bf16.msra.mxu1 %v2996_v7  ;;  %2680 = vmatprep.subr.bf16.mxu0 %v2997_v8  ;;  %v3012_v23 = vld [vmem:[#allocation6 + $0x90] sm:$0xff]   ;;  %v3013_v24 = vld [vmem:[#allocation6 + $0x48] sm:$0xff]   ;;  %v3017_v28 = vld [vmem:[#allocation6 + $0x40] sm:$0xff]  }
  0x3c   :  { %2702 = vmatprep.subr.bf16.mxu1 %v2998_v9  ;;  %v3014_v25 = vld [vmem:[#allocation6 + $0xc8] sm:$0xff]   ;;  %v3018_v29 = vld [vmem:[#allocation6 + $0xc0] sm:$0xff]   ;;  %v206_v32 = vld [vmem:[%s3548_s1 + $0x8] sm:$0xff] }
  0x3d   :  { %v3015_v26 = vld [vmem:[#allocation6 + $0x8] sm:$0xff]   ;;  %v3019_v30 = vld [vmem:[#allocation6] sm:$0xff]   ;;  %v205_v34 = vld [vmem:[%s3548_s1] sm:$0xff]  ;;  %v222_v35 = vpack.c.bf16 %v206_v32, %v206_v32 }
  0x3e   :  { %2681 = vmatpush3.bf16.msra.mxu0 %v2999_v10  ;;  %v3016_v27 = vld [vmem:[#allocation6 + $0x88] sm:$0xff]   ;;  %v3020_v31 = vld [vmem:[#allocation6 + $0x80] sm:$0xff]   ;;  %v221_v37 = vpack.c.bf16 %v205_v34, %v205_v34  ;;  %v3021_v40 = vld [vmem:[#allocation6 + $0x178] sm:$0xff]  }
  0x3f   :  { %2703 = vmatpush3.bf16.msra.mxu1 %v3000_v11  ;;  %2682 = vmatprep.subr.bf16.mxu0 %v3001_v12  ;;  %v208_v33 = vld [vmem:[%s3548_s1 + $0x18] sm:$0xff]  ;;  %v207_v38 = vld [vmem:[%s3548_s1 + $0x10] sm:$0xff]  ;;  %v3022_v41 = vld [vmem:[#allocation6 + $0x138] sm:$0xff]  }
  0x40   :  { %2704 = vmatprep.subr.bf16.mxu1 %v3002_v13  ;;  %v224_v36 = vpack.c.bf16 %v208_v33, %v208_v33  ;;  %v223_v39 = vpack.c.bf16 %v207_v38, %v207_v38  ;;  %1293 = vmatprep.mubr.bf16.mxu0 %v222_v35  ;;  %v3023_v42 = vld [vmem:[#allocation6 + $0x1f8] sm:$0xff]   ;;  %v3025_v44 = vld [vmem:[#allocation6 + $0x170] sm:$0xff]   ;;  %v3029_v48 = vld [vmem:[#allocation6 + $0x168] sm:$0xff]  }
  0x41   :  { %v3024_v43 = vld [vmem:[#allocation6 + $0x1b8] sm:$0xff]   ;;  %v3026_v45 = vld [vmem:[#allocation6 + $0x130] sm:$0xff]   ;;  %v3030_v49 = vld [vmem:[#allocation6 + $0x128] sm:$0xff]  }
  0x42   :  { %2683 = vmatpush3.bf16.msra.mxu0 %v3003_v14  ;;  %1333 = vmatprep.mubr.bf16.mxu1 %v224_v36  ;;  %v3027_v46 = vld [vmem:[#allocation6 + $0x1f0] sm:$0xff]   ;;  %v3031_v50 = vld [vmem:[#allocation6 + $0x1e8] sm:$0xff]   ;;  %v3033_v52 = vld [vmem:[#allocation6 + $0x160] sm:$0xff]  }
  0x43   :  { %2705 = vmatpush3.bf16.msra.mxu1 %v3004_v15  ;;  %2684 = vmatprep.subr.bf16.mxu0 %v3005_v16  ;;  %v3028_v47 = vld [vmem:[#allocation6 + $0x1b0] sm:$0xff]   ;;  %v3032_v51 = vld [vmem:[#allocation6 + $0x1a8] sm:$0xff]   ;;  %v3034_v53 = vld [vmem:[#allocation6 + $0x120] sm:$0xff]  }
  0x44   :  { %2706 = vmatprep.subr.bf16.mxu1 %v3006_v17  ;;  %v3035_v54 = vld [vmem:[#allocation6 + $0x1e0] sm:$0xff]   ;;  %v3037_v56 = vld [vmem:[#allocation6 + $0x158] sm:$0xff]   ;;  %v3041_v60 = vld [vmem:[#allocation6 + $0x150] sm:$0xff]  }
  0x45   :  { %v3036_v55 = vld [vmem:[#allocation6 + $0x1a0] sm:$0xff]   ;;  %v3038_v57 = vld [vmem:[#allocation6 + $0x118] sm:$0xff]   ;;  %v3042_v61 = vld [vmem:[#allocation6 + $0x110] sm:$0xff]  }
  0x46   :  { %2685 = vmatpush3.bf16.msra.mxu0 %v3007_v18  ;;  %v3039_v58 = vld [vmem:[#allocation6 + $0x1d8] sm:$0xff]   ;;  %v3043_v62 = vld [vmem:[#allocation6 + $0x1d0] sm:$0xff]   ;;  %v3045_v0 = vld [vmem:[#allocation6 + $0x148] sm:$0xff]  }
  0x47   :  { %2707 = vmatpush3.bf16.msra.mxu1 %v3008_v19  ;;  %2686 = vmatprep.subr.bf16.mxu0 %v3009_v20  ;;  %v3040_v59 = vld [vmem:[#allocation6 + $0x198] sm:$0xff]   ;;  %v3044_v63 = vld [vmem:[#allocation6 + $0x190] sm:$0xff]   ;;  %v3046_v1 = vld [vmem:[#allocation6 + $0x108] sm:$0xff]  }
  0x48   :  { %2708 = vmatprep.subr.bf16.mxu1 %v3010_v21  ;;  %v3047_v2 = vld [vmem:[#allocation6 + $0x1c8] sm:$0xff]   ;;  %v3049_v4 = vld [vmem:[#allocation6 + $0x140] sm:$0xff]   ;;  %v210_v7 = vld [vmem:[%s3548_s1 + $0x28] sm:$0xff] }
  0x49   :  { %v3048_v3 = vld [vmem:[#allocation6 + $0x188] sm:$0xff]   ;;  %v3050_v5 = vld [vmem:[#allocation6 + $0x100] sm:$0xff]   ;;  %v226_v8 = vpack.c.bf16 %v210_v7, %v210_v7  ;;  %v209_v10 = vld [vmem:[%s3548_s1 + $0x20] sm:$0xff] }
  0x4a   :  { %2687 = vmatpush3.bf16.msra.mxu0 %v3011_v22  ;;  %v3051_v6 = vld [vmem:[#allocation6 + $0x1c0] sm:$0xff]   ;;  %v225_v11 = vpack.c.bf16 %v209_v10, %v209_v10  ;;  %v3053_v12 = vld [vmem:[#allocation6 + $0x278] sm:$0xff]   ;;  %v212_v13 = vld [vmem:[%s3548_s1 + $0x38] sm:$0xff] }
  0x4b   :  { %2709 = vmatpush3.bf16.msra.mxu1 %v3012_v23  ;;  %2688 = vmatprep.subr.bf16.mxu0 %v3013_v24  ;;  %v3052_v9 = vld [vmem:[#allocation6 + $0x180] sm:$0xff]   ;;  %v228_v14 = vpack.c.bf16 %v212_v13, %v212_v13  ;;  %v3054_v15 = vld [vmem:[#allocation6 + $0x238] sm:$0xff]   ;;  %v3057_v20 = vld [vmem:[#allocation6 + $0x270] sm:$0xff]  }
  0x4c   :  { %2710 = vmatprep.subr.bf16.mxu1 %v3014_v25  ;;  %v211_v16 = vld [vmem:[%s3548_s1 + $0x30] sm:$0xff]  ;;  %v3055_v18 = vld [vmem:[#allocation6 + $0x2f8] sm:$0xff]   ;;  %v3058_v21 = vld [vmem:[#allocation6 + $0x230] sm:$0xff]  }
  0x4d   :  { %v227_v17 = vpack.c.bf16 %v211_v16, %v211_v16  ;;  %v3056_v19 = vld [vmem:[#allocation6 + $0x2b8] sm:$0xff]   ;;  %v3059_v22 = vld [vmem:[#allocation6 + $0x2f0] sm:$0xff]   ;;  %v3061_v24 = vld [vmem:[#allocation6 + $0x268] sm:$0xff]  }
  0x4e   :  { %2689 = vmatpush3.bf16.msra.mxu0 %v3015_v26  ;;  %v3060_v23 = vld [vmem:[#allocation6 + $0x2b0] sm:$0xff]   ;;  %v3062_v25 = vld [vmem:[#allocation6 + $0x228] sm:$0xff]   ;;  %v3069_v32 = vld [vmem:[#allocation6 + $0x258] sm:$0xff]  }
  0x4f   :  { %2711 = vmatpush3.bf16.msra.mxu1 %v3016_v27  ;;  %2690 = vmatprep.subr.bf16.mxu0 %v3017_v28  ;;  %v3063_v26 = vld [vmem:[#allocation6 + $0x2e8] sm:$0xff]   ;;  %v3065_v28 = vld [vmem:[#allocation6 + $0x260] sm:$0xff]   ;;  %v3070_v33 = vld [vmem:[#allocation6 + $0x218] sm:$0xff]  }
  0x50   :  { %2712 = vmatprep.subr.bf16.mxu1 %v3018_v29  ;;  %v3064_v27 = vld [vmem:[#allocation6 + $0x2a8] sm:$0xff]   ;;  %v3066_v29 = vld [vmem:[#allocation6 + $0x220] sm:$0xff]   ;;  %v3071_v34 = vld [vmem:[#allocation6 + $0x2d8] sm:$0xff]  }
  0x51   :  { %v3072_v35 = vld [vmem:[#allocation6 + $0x298] sm:$0xff]   ;;  %v3073_v36 = vld [vmem:[#allocation6 + $0x250] sm:$0xff]   ;;  %v3100_v7 = vld [vmem:[#allocation6 + $0x3a0] sm:$0xff]  }
  0x52   :  { %2691 = vmatpush3.bf16.msra.mxu0 %v3019_v30  ;;  %v3067_v30 = vld [vmem:[#allocation6 + $0x2e0] sm:$0xff]   ;;  %v3075_v38 = vld [vmem:[#allocation6 + $0x2d0] sm:$0xff]   ;;  %v3103_v10 = vld [vmem:[#allocation6 + $0x3d8] sm:$0xff]  }
  0x53   :  { %2713 = vmatpush3.bf16.msra.mxu1 %v3020_v31  ;;  %2720 = vmatprep.subr.bf16.mxu0 %v3021_v40  ;;  %v3068_v31 = vld [vmem:[#allocation6 + $0x2a0] sm:$0xff]   ;;  %v3077_v40 = vld [vmem:[#allocation6 + $0x248] sm:$0xff]   ;;  %v3106_v13 = vld [vmem:[#allocation6 + $0x310] sm:$0xff]  }
  0x54   :  { %2742 = vmatprep.subr.bf16.mxu1 %v3023_v42  ;;  %v3079_v42 = vld [vmem:[#allocation6 + $0x2c8] sm:$0xff]  }
  0x55   :  { %1294 = vmatmul.mubr.bf16.vlgmr.msra.gmra.mxu0 %v221_v37  ;;  %v3074_v37 = vld [vmem:[#allocation6 + $0x210] sm:$0xff]   ;;  %v3109_v16 = vld [vmem:[#allocation6 + $0x348] sm:$0xff]  }
  0x56   :  { %1334 = vmatmul.mubr.bf16.vlgmr.msra.gmra.mxu1 %v223_v39  ;;  %2721 = vmatpush3.bf16.msra.mxu0 %v3022_v41  ;;  %v3076_v39 = vld [vmem:[#allocation6 + $0x290] sm:$0xff]   ;;  %v3078_v41 = vld [vmem:[#allocation6 + $0x208] sm:$0xff]  }
  0x57   :  { %2743 = vmatpush3.bf16.msra.mxu1 %v3024_v43  ;;  %2722 = vmatprep.subr.bf16.mxu0 %v3025_v44  ;;  %v3080_v43 = vld [vmem:[#allocation6 + $0x288] sm:$0xff]   ;;  %v3081_v44 = vld [vmem:[#allocation6 + $0x240] sm:$0xff]  }
  0x58   :  { %2744 = vmatprep.subr.bf16.mxu1 %v3027_v46  ;;  %1373 = vmatprep.mubr.bf16.mxu0 %v226_v8  ;;  %v3083_v46 = vld [vmem:[#allocation6 + $0x2c0] sm:$0xff]   ;;  %v3101_v8 = vld [vmem:[#allocation6 + $0x358] sm:$0xff]  }
  0x59   :  { %1413 = vmatprep.mubr.bf16.mxu1 %v228_v14  ;;  %v3107_v14 = vld [vmem:[#allocation6 + $0x3d0] sm:$0xff]  }
  0x5a   :  { %2723 = vmatpush3.bf16.msra.mxu0 %v3026_v45  ;;  %v3082_v45 = vld [vmem:[#allocation6 + $0x200] sm:$0xff]  }
  0x5b   :  { %2745 = vmatpush3.bf16.msra.mxu1 %v3028_v47  ;;  %2724 = vmatprep.subr.bf16.mxu0 %v3029_v48  ;;  %v214_v47 = vld [vmem:[%s3548_s1 + $0x48] sm:$0xff] }
  0x5c   :  { %2746 = vmatprep.subr.bf16.mxu1 %v3031_v50  ;;  %v230_v48 = vpack.c.bf16 %v214_v47, %v214_v47  ;;  %v213_v50 = vld [vmem:[%s3548_s1 + $0x40] sm:$0xff]  ;;  %v3132_v47 = vld [vmem:[#allocation4 + $0xa0] sm:$0xff]  }
  0x5e   :  { %2725 = vmatpush3.bf16.msra.mxu0 %v3030_v49  ;;  %v3084_v49 = vld [vmem:[#allocation6 + $0x280] sm:$0xff]  }
  0x5f   :  { %2747 = vmatpush3.bf16.msra.mxu1 %v3032_v51  ;;  %2726 = vmatprep.subr.bf16.mxu0 %v3033_v52  ;;  %v229_v51 = vpack.c.bf16 %v213_v50, %v213_v50  ;;  %v3085_v52 = vld [vmem:[#allocation6 + $0x378] sm:$0xff]  }
  0x60   :  { %2748 = vmatprep.subr.bf16.mxu1 %v3035_v54  ;;  %v3135_v50 = vld [vmem:[#allocation4 + $0xd8] sm:$0xff]  }
  0x62   :  { %2727 = vmatpush3.bf16.msra.mxu0 %v3034_v53  ;;  %v216_v53 = vld [vmem:[%s3548_s1 + $0x58] sm:$0xff] }
  0x63   :  { %2749 = vmatpush3.bf16.msra.mxu1 %v3036_v55  ;;  %2728 = vmatprep.subr.bf16.mxu0 %v3037_v56  ;;  %v232_v54 = vpack.c.bf16 %v216_v53, %v216_v53  ;;  %v3086_v55 = vld [vmem:[#allocation6 + $0x338] sm:$0xff]   ;;  %v215_v56 = vld [vmem:[%s3548_s1 + $0x50] sm:$0xff]  ;;  %v3138_v53 = vld [vmem:[#allocation4 + $0x10] sm:$0xff]  }
  0x64   :  { %2750 = vmatprep.subr.bf16.mxu1 %v3039_v58  ;;  %v3087_v58 = vld [vmem:[#allocation6 + $0x3f8] sm:$0xff]  }
  0x66   :  { %2729 = vmatpush3.bf16.msra.mxu0 %v3038_v57  ;;  %v231_v57 = vpack.c.bf16 %v215_v56, %v215_v56  ;;  %v3141_v56 = vld [vmem:[#allocation4 + $0x48] sm:$0xff]  }
  0x67   :  { %2751 = vmatpush3.bf16.msra.mxu1 %v3040_v59  ;;  %2730 = vmatprep.subr.bf16.mxu0 %v3041_v60  ;;  %v3088_v59 = vld [vmem:[#allocation6 + $0x3b8] sm:$0xff]   ;;  %v3089_v60 = vld [vmem:[#allocation6 + $0x370] sm:$0xff]  }
  0x68   :  { %2752 = vmatprep.subr.bf16.mxu1 %v3043_v62  ;;  %v3091_v62 = vld [vmem:[#allocation6 + $0x3f0] sm:$0xff]  }
  0x6a   :  { %2731 = vmatpush3.bf16.msra.mxu0 %v3042_v61  ;;  %v3090_v61 = vld [vmem:[#allocation6 + $0x330] sm:$0xff]  }
  0x6b   :  { %2753 = vmatpush3.bf16.msra.mxu1 %v3044_v63  ;;  %2732 = vmatprep.subr.bf16.mxu0 %v3045_v0  ;;  %v3092_v63 = vld [vmem:[#allocation6 + $0x3b0] sm:$0xff]   ;;  %v3093_v0 = vld [vmem:[#allocation6 + $0x368] sm:$0xff]  }
  0x6c   :  { %2754 = vmatprep.subr.bf16.mxu1 %v3047_v2  ;;  %v3095_v2 = vld [vmem:[#allocation6 + $0x3e8] sm:$0xff]  }
  0x6e   :  { %2733 = vmatpush3.bf16.msra.mxu0 %v3046_v1  ;;  %v3094_v1 = vld [vmem:[#allocation6 + $0x328] sm:$0xff]  }
  0x6f   :  { %2755 = vmatpush3.bf16.msra.mxu1 %v3048_v3  ;;  %2734 = vmatprep.subr.bf16.mxu0 %v3049_v4  ;;  %v3096_v3 = vld [vmem:[#allocation6 + $0x3a8] sm:$0xff]   ;;  %v3097_v4 = vld [vmem:[#allocation6 + $0x360] sm:$0xff]  }
  0x70   :  { %2756 = vmatprep.subr.bf16.mxu1 %v3051_v6  ;;  %v3099_v6 = vld [vmem:[#allocation6 + $0x3e0] sm:$0xff]  }
  0x72   :  { %2735 = vmatpush3.bf16.msra.mxu0 %v3050_v5  ;;  %v3098_v5 = vld [vmem:[#allocation6 + $0x320] sm:$0xff]  }
  0x73   :  { %2757 = vmatpush3.bf16.msra.mxu1 %v3052_v9  ;;  %2764 = vmatprep.subr.bf16.mxu0 %v3053_v12  ;;  %v3102_v9 = vld [vmem:[#allocation6 + $0x318] sm:$0xff]   ;;  %v3105_v12 = vld [vmem:[#allocation6 + $0x350] sm:$0xff]  }
  0x74   :  { %2786 = vmatprep.subr.bf16.mxu1 %v3055_v18  ;;  %v3111_v18 = vld [vmem:[#allocation6 + $0x3c8] sm:$0xff]  }
  0x75   :  { %1374 = vmatmul.mubr.bf16.vlgmr.msra.gmra.mxu0 %v225_v11  ;;  %v3104_v11 = vld [vmem:[#allocation6 + $0x398] sm:$0xff]  }
  0x76   :  { %2765 = vmatpush3.bf16.msra.mxu0 %v3054_v15  ;;  %1414 = vmatmul.mubr.bf16.vlgmr.msra.gmra.mxu1 %v227_v17  ;;  %v3108_v15 = vld [vmem:[#allocation6 + $0x390] sm:$0xff]   ;;  %v3110_v17 = vld [vmem:[#allocation6 + $0x308] sm:$0xff]  }
  0x77   :  { %2787 = vmatpush3.bf16.msra.mxu1 %v3056_v19  ;;  %2766 = vmatprep.subr.bf16.mxu0 %v3057_v20  ;;  %v3112_v19 = vld [vmem:[#allocation6 + $0x388] sm:$0xff]   ;;  %v3113_v20 = vld [vmem:[#allocation6 + $0x340] sm:$0xff]  }
  0x78   :  { %2788 = vmatprep.subr.bf16.mxu1 %v3059_v22  ;;  %1453 = vmatprep.mubr.bf16.mxu0 %v230_v48  ;;  %v3115_v22 = vld [vmem:[#allocation6 + $0x3c0] sm:$0xff]   ;;  %v3133_v48 = vld [vmem:[#allocation4 + $0x58] sm:$0xff]  }
  0x79   :  { %1493 = vmatprep.mubr.bf16.mxu1 %v232_v54  ;;  %v3139_v54 = vld [vmem:[#allocation4 + $0xd0] sm:$0xff]  }
  0x7a   :  { %2767 = vmatpush3.bf16.msra.mxu0 %v3058_v21  ;;  %v3114_v21 = vld [vmem:[#allocation6 + $0x300] sm:$0xff]  }
  0x7b   :  { %2789 = vmatpush3.bf16.msra.mxu1 %v3060_v23  ;;  %2768 = vmatprep.subr.bf16.mxu0 %v3061_v24  ;;  %v218_v23 = vld [vmem:[%s3548_s1 + $0x68] sm:$0xff] }
  0x7c   :  { %2790 = vmatprep.subr.bf16.mxu1 %v3063_v26  ;;  %v234_v24 = vpack.c.bf16 %v218_v23, %v218_v23  ;;  %v217_v26 = vld [vmem:[%s3548_s1 + $0x60] sm:$0xff]  ;;  %v3162_v23 = vld [vmem:[#allocation4 + $0x108] sm:$0xff]  }
  0x7e   :  { %2769 = vmatpush3.bf16.msra.mxu0 %v3062_v25  ;;  %v3116_v25 = vld [vmem:[#allocation6 + $0x380] sm:$0xff]  }
  0x7f   :  { %2791 = vmatpush3.bf16.msra.mxu1 %v3064_v27  ;;  %2770 = vmatprep.subr.bf16.mxu0 %v3065_v28  ;;  %v233_v27 = vpack.c.bf16 %v217_v26, %v217_v26  ;;  %v3117_v28 = vld [vmem:[#allocation4 + $0x78] sm:$0xff]   ;;  %v101_v26 = vld [vmem:[#allocation2 + $0x20] sm:$0xff] }
  0x80   :  { %2792 = vmatprep.subr.bf16.mxu1 %v3067_v30 }
  0x82   :  { %2771 = vmatpush3.bf16.msra.mxu0 %v3066_v29  ;;  %v220_v29 = vld [vmem:[%s3548_s1 + $0x78] sm:$0xff] }
  0x83   :  { %2793 = vmatpush3.bf16.msra.mxu1 %v3068_v31  ;;  %2772 = vmatprep.subr.bf16.mxu0 %v3069_v32  ;;  %v236_v30 = vpack.c.bf16 %v220_v29, %v220_v29  ;;  %v3118_v31 = vld [vmem:[#allocation4 + $0x38] sm:$0xff]   ;;  %v219_v32 = vld [vmem:[%s3548_s1 + $0x70] sm:$0xff] }
  0x84   :  { %2794 = vmatprep.subr.bf16.mxu1 %v3071_v34  ;;  %v3119_v34 = vld [vmem:[#allocation4 + $0xf8] sm:$0xff]  }
  0x86   :  { %2773 = vmatpush3.bf16.msra.mxu0 %v3070_v33  ;;  %v235_v33 = vpack.c.bf16 %v219_v32, %v219_v32 }
  0x87   :  { %2795 = vmatpush3.bf16.msra.mxu1 %v3072_v35  ;;  %2774 = vmatprep.subr.bf16.mxu0 %v3073_v36  ;;  %v3120_v35 = vld [vmem:[#allocation4 + $0xb8] sm:$0xff]   ;;  %v3121_v36 = vld [vmem:[#allocation4 + $0x70] sm:$0xff]  }
  0x88   :  { %2796 = vmatprep.subr.bf16.mxu1 %v3075_v38  ;;  %v3123_v38 = vld [vmem:[#allocation4 + $0xf0] sm:$0xff]  }
  0x8a   :  { %2775 = vmatpush3.bf16.msra.mxu0 %v3074_v37  ;;  %v3122_v37 = vld [vmem:[#allocation4 + $0x30] sm:$0xff]  }
  0x8b   :  { %2797 = vmatpush3.bf16.msra.mxu1 %v3076_v39  ;;  %2776 = vmatprep.subr.bf16.mxu0 %v3077_v40  ;;  %v3124_v39 = vld [vmem:[#allocation4 + $0xb0] sm:$0xff]   ;;  %v3125_v40 = vld [vmem:[#allocation4 + $0x68] sm:$0xff]  }
  0x8c   :  { %2798 = vmatprep.subr.bf16.mxu1 %v3079_v42  ;;  %v3127_v42 = vld [vmem:[#allocation4 + $0xe8] sm:$0xff]  }
  0x8e   :  { %2777 = vmatpush3.bf16.msra.mxu0 %v3078_v41  ;;  %v3126_v41 = vld [vmem:[#allocation4 + $0x28] sm:$0xff]  }
  0x8f   :  { %2799 = vmatpush3.bf16.msra.mxu1 %v3080_v43  ;;  %2778 = vmatprep.subr.bf16.mxu0 %v3081_v44  ;;  %v3128_v43 = vld [vmem:[#allocation4 + $0xa8] sm:$0xff]   ;;  %v3129_v44 = vld [vmem:[#allocation4 + $0x60] sm:$0xff]  }
  0x90   :  { %2800 = vmatprep.subr.bf16.mxu1 %v3083_v46  ;;  %v3131_v46 = vld [vmem:[#allocation4 + $0xe0] sm:$0xff]  }
  0x92   :  { %2779 = vmatpush3.bf16.msra.mxu0 %v3082_v45  ;;  %v3130_v45 = vld [vmem:[#allocation4 + $0x20] sm:$0xff]  }
  0x93   :  { %2801 = vmatpush3.bf16.msra.mxu1 %v3084_v49  ;;  %2808 = vmatprep.subr.bf16.mxu0 %v3085_v52  ;;  %v3134_v49 = vld [vmem:[#allocation4 + $0x18] sm:$0xff]   ;;  %v3137_v52 = vld [vmem:[#allocation4 + $0x50] sm:$0xff]  }
  0x94   :  { %2830 = vmatprep.subr.bf16.mxu1 %v3087_v58  ;;  %v3143_v58 = vld [vmem:[#allocation4 + $0xc8] sm:$0xff]  }
  0x95   :  { %1454 = vmatmul.mubr.bf16.vlgmr.msra.gmra.mxu0 %v229_v51  ;;  %v3136_v51 = vld [vmem:[#allocation4 + $0x98] sm:$0xff]  }
  0x96   :  { %2809 = vmatpush3.bf16.msra.mxu0 %v3086_v55  ;;  %1494 = vmatmul.mubr.bf16.vlgmr.msra.gmra.mxu1 %v231_v57  ;;  %v3140_v55 = vld [vmem:[#allocation4 + $0x90] sm:$0xff]   ;;  %v3142_v57 = vld [vmem:[#allocation4 + $0x8] sm:$0xff]  }
  0x97   :  { %2831 = vmatpush3.bf16.msra.mxu1 %v3088_v59  ;;  %2810 = vmatprep.subr.bf16.mxu0 %v3089_v60  ;;  %v3144_v59 = vld [vmem:[#allocation4 + $0x88] sm:$0xff]   ;;  %v3145_v60 = vld [vmem:[#allocation4 + $0x40] sm:$0xff]  }
  0x98   :  { %2832 = vmatprep.subr.bf16.mxu1 %v3091_v62  ;;  %1533 = vmatprep.mubr.bf16.mxu0 %v234_v24  ;;  %v3147_v62 = vld [vmem:[#allocation4 + $0xc0] sm:$0xff]  }
  0x99   :  { %1573 = vmatprep.mubr.bf16.mxu1 %v236_v30  ;;  %v3163_v24 = vld [vmem:[#allocation4 + $0x140] sm:$0xff]  }
  0x9a   :  { %2811 = vmatpush3.bf16.msra.mxu0 %v3090_v61  ;;  %v3146_v61 = vld [vmem:[#allocation4] sm:$0xff]  }
  0x9b   :  { %2833 = vmatpush3.bf16.msra.mxu1 %v3092_v63  ;;  %2812 = vmatprep.subr.bf16.mxu0 %v3093_v0  ;;  %v98_v63 = vld [vmem:[#allocation2 + $0x8] sm:$0xff] }
  0x9c   :  { %2834 = vmatprep.subr.bf16.mxu1 %v3095_v2  ;;  %v104_v0 = vpack.c.bf16 %v98_v63, %v98_v63  ;;  %v97_v2 = vld [vmem:[#allocation2] sm:$0xff] }
  0x9e   :  { %2813 = vmatpush3.bf16.msra.mxu0 %v3094_v1  ;;  %v3148_v1 = vld [vmem:[#allocation4 + $0x80] sm:$0xff]  }
  0x9f   :  { %2835 = vmatpush3.bf16.msra.mxu1 %v3096_v3  ;;  %2814 = vmatprep.subr.bf16.mxu0 %v3097_v4  ;;  %v103_v3 = vpack.c.bf16 %v97_v2, %v97_v2  ;;  %v3149_v4 = vld [vmem:[#allocation4 + $0x178] sm:$0xff]   ;;  %v3186_v2 = vld [vmem:[#allocation7] ss:$8 sps:$4 sm:$0xff]  }
  0xa0   :  { %2836 = vmatprep.subr.bf16.mxu1 %v3099_v6 }
  0xa2   :  { %2815 = vmatpush3.bf16.msra.mxu0 %v3098_v5  ;;  %v100_v5 = vld [vmem:[#allocation2 + $0x18] sm:$0xff] }
  0xa3   :  { %2837 = vmatpush3.bf16.msra.mxu1 %v3100_v7  ;;  %2816 = vmatprep.subr.bf16.mxu0 %v3101_v8  ;;  %v106_v6 = vpack.c.bf16 %v100_v5, %v100_v5  ;;  %v3150_v7 = vld [vmem:[#allocation4 + $0x138] sm:$0xff]   ;;  %v99_v8 = vld [vmem:[#allocation2 + $0x10] sm:$0xff]  ;;  %v3316_v5 = vmov 0.0  }
  0xa4   :  { %2838 = vmatprep.subr.bf16.mxu1 %v3103_v10  ;;  %v3151_v10 = vld [vmem:[#allocation4 + $0x170] sm:$0xff]  }
  0xa6   :  { %2817 = vmatpush3.bf16.msra.mxu0 %v3102_v9  ;;  %v105_v9 = vpack.c.bf16 %v99_v8, %v99_v8  ;;  %v3195_v8 = vld [vmem:[%s3555_s8 + $0x20] sm:$0xff]  }
  0xa7   :  { %2839 = vmatpush3.bf16.msra.mxu1 %v3104_v11  ;;  %2818 = vmatprep.subr.bf16.mxu0 %v3105_v12  ;;  %v3152_v11 = vld [vmem:[#allocation4 + $0x130] sm:$0xff]   ;;  %v3153_v12 = vld [vmem:[#allocation4 + $0x168] sm:$0xff]  }
  0xa8   :  { %2840 = vmatprep.subr.bf16.mxu1 %v3107_v14  ;;  %v3155_v14 = vld [vmem:[#allocation4 + $0x160] sm:$0xff]  }
  0xaa   :  { %2819 = vmatpush3.bf16.msra.mxu0 %v3106_v13  ;;  %v3154_v13 = vld [vmem:[#allocation4 + $0x128] sm:$0xff]  }
  0xab   :  { %2841 = vmatpush3.bf16.msra.mxu1 %v3108_v15  ;;  %2820 = vmatprep.subr.bf16.mxu0 %v3109_v16  ;;  %v3156_v15 = vld [vmem:[#allocation4 + $0x120] sm:$0xff]   ;;  %v3157_v16 = vld [vmem:[#allocation4 + $0x158] sm:$0xff]  }
  0xac   :  { %2842 = vmatprep.subr.bf16.mxu1 %v3111_v18  ;;  %v102_v18 = vld [vmem:[#allocation2 + $0x28] sm:$0xff] }
  0xae   :  { %2821 = vmatpush3.bf16.msra.mxu0 %v3110_v17  ;;  %v3158_v17 = vld [vmem:[#allocation4 + $0x118] sm:$0xff]  }
  0xaf   :  { %2843 = vmatpush3.bf16.msra.mxu1 %v3112_v19  ;;  %2822 = vmatprep.subr.bf16.mxu0 %v3113_v20  ;;  %v3159_v19 = vld [vmem:[#allocation4 + $0x150] sm:$0xff]   ;;  %v108_v20 = vpack.c.bf16 %v102_v18, %v102_v18 }
  0xb0   :  { %2844 = vmatprep.subr.bf16.mxu1 %v3115_v22  ;;  %v3161_v22 = vld [vmem:[#allocation4 + $0x148] sm:$0xff]  }
  0xb2   :  { %2823 = vmatpush3.bf16.msra.mxu0 %v3114_v21  ;;  %v3160_v21 = vld [vmem:[#allocation4 + $0x110] sm:$0xff]  }
  0xb3   :  { %2845 = vmatpush3.bf16.msra.mxu1 %v3116_v25  ;;  %2852 = vmatprep.subr.bf16.mxu0 %v3117_v28  ;;  %v3164_v25 = vld [vmem:[#allocation4 + $0x100] sm:$0xff]  }
  0xb4   :  { %2874 = vmatprep.subr.bf16.mxu1 %v3119_v34 }
  0xb5   :  { %1534 = vmatmul.mubr.bf16.vlgmr.msra.gmra.mxu0 %v233_v27  ;;  %v107_v27 = vpack.c.bf16 %v101_v26, %v101_v26 }
  0xb6   :  { %2853 = vmatpush3.bf16.msra.mxu0 %v3118_v31  ;;  %1574 = vmatmul.mubr.bf16.vlgmr.msra.gmra.mxu1 %v235_v33 }
  0xb7   :  { %2875 = vmatpush3.bf16.msra.mxu1 %v3120_v35  ;;  %2854 = vmatprep.subr.bf16.mxu0 %v3121_v36 }
  0xb8   :  { %2876 = vmatprep.subr.bf16.mxu1 %v3123_v38  ;;  %1901 = vmatprep.mubr.bf16.mxu0 %v104_v0  ;;  %v3183_v0 = vld [vmem:[#allocation7 + $0x10] ss:$8 sps:$4 sm:$0xff]  }
  0xb9   :  { %1941 = vmatprep.mubr.bf16.mxu1 %v106_v6  ;;  %v3191_v6 = vld [vmem:[%s3555_s8 + $0x30] sm:$0xff]  }
  0xba   :  { %2855 = vmatpush3.bf16.msra.mxu0 %v3122_v37 }
  0xbb   :  { %2877 = vmatpush3.bf16.msra.mxu1 %v3124_v39  ;;  %2856 = vmatprep.subr.bf16.mxu0 %v3125_v40  ;;  %v3165_v39 = vld [vmem:[#allocation7 + $0x70] ss:$8 sps:$4 sm:$0xff]   ;;  %v3167_v40 = vld [vmem:[#allocation7 + $0x74] ss:$8 sps:$4 sm:$0xff]  }
  0xbc   :  { %2878 = vmatprep.subr.bf16.mxu1 %v3127_v42  ;;  %v3168_v42 = vld [vmem:[#allocation7 + $0x60] ss:$8 sps:$4 sm:$0xff]  }
  0xbe   :  { %2857 = vmatpush3.bf16.msra.mxu0 %v3126_v41  ;;  %v3170_v41 = vld [vmem:[#allocation7 + $0x64] ss:$8 sps:$4 sm:$0xff]  }
  0xbf   :  { %2879 = vmatpush3.bf16.msra.mxu1 %v3128_v43  ;;  %2858 = vmatprep.subr.bf16.mxu0 %v3129_v44  ;;  %v3173_v43 = vld [vmem:[#allocation7 + $0x54] ss:$8 sps:$4 sm:$0xff]   ;;  %v3171_v44 = vld [vmem:[#allocation7 + $0x50] ss:$8 sps:$4 sm:$0xff]  }
  0xc0   :  { %2880 = vmatprep.subr.bf16.mxu1 %v3131_v46  ;;  %v3174_v46 = vld [vmem:[#allocation7 + $0x40] ss:$8 sps:$4 sm:$0xff]  }
  0xc2   :  { %2859 = vmatpush3.bf16.msra.mxu0 %v3130_v45  ;;  %v3176_v45 = vld [vmem:[#allocation7 + $0x44] ss:$8 sps:$4 sm:$0xff]  }
  0xc3   :  { %2881 = vmatpush3.bf16.msra.mxu1 %v3132_v47  ;;  %2860 = vmatprep.subr.bf16.mxu0 %v3133_v48  ;;  %v3179_v47 = vld [vmem:[#allocation7 + $0x34] ss:$8 sps:$4 sm:$0xff]   ;;  %v3177_v48 = vld [vmem:[#allocation7 + $0x30] ss:$8 sps:$4 sm:$0xff]  }
  0xc4   :  { %2882 = vmatprep.subr.bf16.mxu1 %v3135_v50 }
  0xc6   :  { %2861 = vmatpush3.bf16.msra.mxu0 %v3134_v49 }
  0xc7   :  { %2883 = vmatpush3.bf16.msra.mxu1 %v3136_v51  ;;  %2862 = vmatprep.subr.bf16.mxu0 %v3137_v52 }
  0xc8   :  { %2884 = vmatprep.subr.bf16.mxu1 %v3139_v54 }
  0xca   :  { %2863 = vmatpush3.bf16.msra.mxu0 %v3138_v53  ;;  %v3182_v53 = vld [vmem:[#allocation7 + $0x24] ss:$8 sps:$4 sm:$0xff]  }
  0xcb   :  { %2885 = vmatpush3.bf16.msra.mxu1 %v3140_v55  ;;  %2864 = vmatprep.subr.bf16.mxu0 %v3141_v56  ;;  %v3180_v56 = vld [vmem:[#allocation7 + $0x20] ss:$8 sps:$4 sm:$0xff]  }
  0xcc   :  { %2886 = vmatprep.subr.bf16.mxu1 %v3143_v58 }
  0xce   :  { %2865 = vmatpush3.bf16.msra.mxu0 %v3142_v57 }
  0xcf   :  { %2887 = vmatpush3.bf16.msra.mxu1 %v3144_v59  ;;  %2866 = vmatprep.subr.bf16.mxu0 %v3145_v60 }
  0xd0   :  { %2888 = vmatprep.subr.bf16.mxu1 %v3147_v62  ;;  %v3185_v62 = vld [vmem:[#allocation7 + $0x14] ss:$8 sps:$4 sm:$0xff]  }
  0xd2   :  { %2867 = vmatpush3.bf16.msra.mxu0 %v3146_v61 }
  0xd3   :  { %2889 = vmatpush3.bf16.msra.mxu1 %v3148_v1  ;;  %2896 = vmatprep.subr.bf16.mxu0 %v3149_v4  ;;  %v3188_v1 = vld [vmem:[#allocation7 + $0x4] ss:$8 sps:$4 sm:$0xff]  }
  0xd4   :  { %2107 = vmatprep.subr.bf16.mxu1 %v3167_v40  ;;  %v3189_v4 = vld [vmem:[%s3555_s8 + $0x38] sm:$0xff]  }
  0xd5   :  { %1902 = vmatmul.mubr.bf16.vlgmr.msra.gmra.mxu0 %v103_v3  ;;  %v3315_v3 = vmov 0  }
  0xd6   :  { %2897 = vmatpush3.bf16.msra.mxu0 %v3150_v7  ;;  %1942 = vmatmul.mubr.bf16.vlgmr.msra.gmra.mxu1 %v105_v9  ;;  %v3193_v7 = vld [vmem:[%s3555_s8 + $0x28] sm:$0xff]   ;;  %v3197_v9 = vld [vmem:[%s3555_s8 + $0x18] sm:$0xff]  }
  0xd7   :  { %2898 = vmatprep.subr.bf16.mxu0 %v3151_v10  ;;  %1981 = vmatprep.mubr.bf16.mxu0 %v108_v20 }
  0xd8   :  { %2108 = vmatpush1.bf16.msra.mxu1 %v3165_v39  ;;  %2139 = vmatprep.mubr.bf16.mxu1 %v3315_v3 }
  0xd9   :  { %2109 = vmatprep.subr.bf16.mxu1 %v3170_v41  ;;  %2987 = vset.pattern.permute.xlu1 %v3315_v3 }
  0xda   :  { %2899 = vmatpush3.bf16.msra.mxu0 %v3152_v11  ;;  %2988 = vset.pattern.permute.xlu0 %v3315_v3  ;;  %v2017_v3 = vlaneseq }
  0xdb   :  { %2900 = vmatprep.subr.bf16.mxu0 %v3153_v12 }
  0xdc   :  { %2110 = vmatpush1.bf16.msra.mxu1 %v3168_v42 }
  0xdd   :  { %2111 = vmatprep.subr.bf16.mxu1 %v3173_v43 }
  0xde   :  { %2901 = vmatpush3.bf16.msra.mxu0 %v3154_v13  ;;  %v3199_v13 = vld [vmem:[%s3555_s8 + $0x10] sm:$0xff]  }
  0xdf   :  { %2902 = vmatprep.subr.bf16.mxu0 %v3155_v14 }
  0xe0   :  { %2112 = vmatpush1.bf16.msra.mxu1 %v3171_v44 }
  0xe1   :  { %2113 = vmatprep.subr.bf16.mxu1 %v3176_v45 }
  0xe2   :  { %2903 = vmatpush3.bf16.msra.mxu0 %v3156_v15 }
  0xe3   :  { %2904 = vmatprep.subr.bf16.mxu0 %v3157_v16 }
  0xe4   :  { %2114 = vmatpush1.bf16.msra.mxu1 %v3174_v46 }
  0xe5   :  { %2115 = vmatprep.subr.bf16.mxu1 %v3179_v47 }
  0xe6   :  { %2905 = vmatpush3.bf16.msra.mxu0 %v3158_v17 }
  0xe7   :  { %2906 = vmatprep.subr.bf16.mxu0 %v3159_v19 }
  0xe8   :  { %2116 = vmatpush1.bf16.msra.mxu1 %v3177_v48 }
  0xe9   :  { %2117 = vmatprep.subr.bf16.mxu1 %v3182_v53 }
  0xea   :  { %2907 = vmatpush3.bf16.msra.mxu0 %v3160_v21 }
  0xeb   :  { %2908 = vmatprep.subr.bf16.mxu0 %v3161_v22 }
  0xec   :  { %2118 = vmatpush1.bf16.msra.mxu1 %v3180_v56  ;;  %v3190_v56 = vld [vmem:[%s3557_s10 + $0x38] sm:$0xff]  }
  0xed   :  { %2119 = vmatprep.subr.bf16.mxu1 %v3185_v62  ;;  %v3200_v62 = vld [vmem:[%s3557_s10 + $0x10] sm:$0xff]  }
  0xee   :  { %2909 = vmatpush3.bf16.msra.mxu0 %v3162_v23 }
  0xef   :  { %2910 = vmatprep.subr.bf16.mxu0 %v3163_v24 }
  0xf0   :  { %2120 = vmatpush1.bf16.msra.mxu1 %v3183_v0  ;;  %v3202_v0 = vld [vmem:[%s3557_s10 + $0x8] sm:$0xff]  }
  0xf1   :  { %2121 = vmatprep.subr.bf16.mxu1 %v3188_v1  ;;  %v3203_v1 = vld [vmem:[%s3555_s8] sm:$0xff]  }
  0xf2   :  { %2911 = vmatpush3.bf16.msra.mxu0 %v3164_v25 }
  0xf3   :  { %2936 = vmatprep.subr.bf16.mxu0 %v3316_v5 }
  0xf4   :  { %2122 = vmatpush1.bf16.msra.mxu1 %v3186_v2  ;;  %v3204_v2 = vld [vmem:[%s3557_s10] sm:$0xff]  }
  0xf5   :  { %1982 = vmatmul.mubr.bf16.vlgmr.msra.gmra.mxu0 %v107_v27  ;;  %2956 = vmatprep.subr.bf16.mxu1 %v3316_v5 }
  0xf6   :  { %2937 = vmatpush3.bf16.msra.mxu0 %v3189_v4  ;;  %2952 = vmatprep.mubr.msk.bf16.mxu0 %vm3317_vm0, %v3316_v5  ;;  %v2018_v4 = vshrl.u32 %v2017_v3, 7 }
  0xf7   :  { %2938 = vmatprep.subr.bf16.mxu0 %v3316_v5 }
  0xfa   :  { %2939 = vmatpush3.bf16.msra.mxu0 %v3191_v6  ;;  %v2019_v6 = vsub.s32 0, %v2018_v4 }
  0xfb   :  { %2940 = vmatprep.subr.bf16.mxu0 %v3316_v5 }
  0xfe   :  { %2941 = vmatpush3.bf16.msra.mxu0 %v3193_v7  ;;  %v2015_v7 = vld [vmem:[%s3554_s7] sm:$0x3] }
  0xff   :  { %2942 = vmatprep.subr.bf16.mxu0 %v3316_v5 }
 0x102   :  { %2943 = vmatpush3.bf16.msra.mxu0 %v3195_v8  ;;  %v2023_v8 = vsub.s32 1, %v2018_v4 }
 0x103   :  { %2944 = vmatprep.subr.bf16.mxu0 %v3316_v5 }
 0x106   :  { %2945 = vmatpush3.bf16.msra.mxu0 %v3197_v9  ;;  %v2020_v9 = vrot.slane %v2015_v7, %v2019_v6 }
 0x107   :  { %2946 = vmatprep.subr.bf16.mxu0 %v3316_v5 }
 0x10a   :  { %2947 = vmatpush3.bf16.msra.mxu0 %v3199_v13 }
 0x10b   :  { %2948 = vmatprep.subr.bf16.mxu0 %v3316_v5 }
 0x115   :  { %v2692_v28 = vpop.f32.mrf.mxu0 }
 0x116   :  { %v2714_v29 = vpop.f32.mrf.mxu1 }
 0x117   :  { %v2693_v30 = vpop.f32.mrf.mxu0 }
 0x118   :  { %v2715_v31 = vpop.f32.mrf.mxu1  ;;  %v2694_v32 = vadd.f32 %v2693_v30, %v2692_v28 }
 0x119   :  { %v2716_v33 = vadd.f32 %v2715_v31, %v2714_v29  ;;  %v2695_v34 = vpop.f32.mrf.mxu0 }
 0x11a   :  { %v2717_v35 = vpop.f32.mrf.mxu1 }
 0x11b   :  { %v1336_v36 = vadd.f32 %v2716_v33, %v2694_v32  ;;  %v2696_v37 = vpop.f32.mrf.mxu0 }
 0x11c   :  { %v2718_v38 = vpop.f32.mrf.mxu1 }
 0x135   :  { %v2736_v49 = vpop.f32.mrf.mxu0 }
 0x136   :  { %v2758_v51 = vpop.f32.mrf.mxu1 }
 0x137   :  { %v2737_v50 = vpop.f32.mrf.mxu0 }
 0x138   :  { %v2738_v52 = vadd.f32 %v2737_v50, %v2736_v49  ;;  %v2759_v55 = vpop.f32.mrf.mxu1  ;;  %v2641_v50 = vld [vmem:[%s3552_s5] ss:$0 sm:$0xff] }
 0x139   :  { %v2739_v54 = vpop.f32.mrf.mxu0  ;;  %v2760_v58 = vadd.f32 %v2759_v55, %v2758_v51 }
 0x13a   :  { %v1376_v57 = vadd.f32 %v2738_v52, %v1336_v36  ;;  %v2761_v60 = vpop.f32.mrf.mxu1 }
 0x13b   :  { %v2740_v59 = vpop.f32.mrf.mxu0  ;;  %v3196_v60 = vld [vmem:[%s3557_s10 + $0x20] sm:$0xff]  }
 0x13c   :  { %v1416_v61 = vadd.f32 %v2760_v58, %v1376_v57  ;;  %v2762_v63 = vpop.f32.mrf.mxu1  ;;  %v3192_v58 = vld [vmem:[%s3557_s10 + $0x30] sm:$0xff]   ;;  %v3194_v59 = vld [vmem:[%s3557_s10 + $0x28] sm:$0xff]  }
 0x13d   :  { %v3201_v63 = vld [vmem:[%s3555_s8 + $0x8] sm:$0xff]  }
 0x13e   :  { %2949 = vmatpush3.bf16.msra.mxu0 %v3201_v63 }
 0x13f   :  { %2950 = vmatprep.subr.bf16.mxu0 %v3316_v5 }
 0x142   :  { %2951 = vmatpush3.bf16.msra.mxu0 %v3203_v1 }
 0x155   :  { %v2780_v10 = vpop.f32.mrf.mxu0 }
 0x156   :  { %v2802_v12 = vpop.f32.mrf.mxu1 }
 0x157   :  { %v2781_v11 = vpop.f32.mrf.mxu0 }
 0x158   :  { %v2782_v14 = vadd.f32 %v2781_v11, %v2780_v10  ;;  %v2803_v16 = vpop.f32.mrf.mxu1  ;;  %v2024_v10 = vrot.slane %v2015_v7, %v2023_v8 }
 0x159   :  { %v2783_v15 = vpop.f32.mrf.mxu0  ;;  %v2804_v18 = vadd.f32 %v2803_v16, %v2802_v12 }
 0x15a   :  { %v1456_v17 = vadd.f32 %v2782_v14, %v1416_v61  ;;  %v2805_v20 = vpop.f32.mrf.mxu1  ;;  %v3198_v61 = vld [vmem:[%s3557_s10 + $0x18] sm:$0xff]  }
 0x15b   :  { %v2784_v19 = vpop.f32.mrf.mxu0  ;;  %v2658_v20 = vld [vmem:[%s3556_s9] ss:$0 sm:$0xff] }
 0x15c   :  { %v1496_v21 = vadd.f32 %v2804_v18, %v1456_v17  ;;  %v2806_v22 = vpop.f32.mrf.mxu1 }
 0x15d   :  { %v2667_v22 = vld [vmem:[%s3558_s11] ss:$0 sm:$0xff] }
 0x175   :  { %v2824_v23 = vpop.f32.mrf.mxu0 }
 0x176   :  { %v2846_v25 = vpop.f32.mrf.mxu1 }
 0x177   :  { %v2825_v24 = vpop.f32.mrf.mxu0 }
 0x178   :  { %v2847_v27 = vpop.f32.mrf.mxu1  ;;  %v2826_v39 = vadd.f32 %v2825_v24, %v2824_v23 }
 0x179   :  { %v2827_v26 = vpop.f32.mrf.mxu0  ;;  %v2848_v41 = vadd.f32 %v2847_v27, %v2846_v25 }
 0x17a   :  { %v2849_v29 = vpop.f32.mrf.mxu1  ;;  %v1536_v40 = vadd.f32 %v2826_v39, %v1496_v21 }
 0x17b   :  { %v2828_v28 = vpop.f32.mrf.mxu0 }
 0x17c   :  { %v2850_v30 = vpop.f32.mrf.mxu1  ;;  %v1576_v43 = vadd.f32 %v2848_v41, %v1536_v40 }
 0x195   :  { %v2868_v31 = vpop.f32.mrf.mxu0 }
 0x196   :  { %v2890_v33 = vpop.f32.mrf.mxu1 }
 0x197   :  { %v2869_v32 = vpop.f32.mrf.mxu0 }
 0x198   :  { %v2891_v35 = vpop.f32.mrf.mxu1  ;;  %v2870_v42 = vadd.f32 %v2869_v32, %v2868_v31 }
 0x199   :  { %v2871_v34 = vpop.f32.mrf.mxu0  ;;  %v2892_v45 = vadd.f32 %v2891_v35, %v2890_v33 }
 0x19a   :  { %v2893_v37 = vpop.f32.mrf.mxu1  ;;  %v1904_v44 = vadd.f32 %v2870_v42, %v1576_v43 }
 0x19b   :  { %v2872_v36 = vpop.f32.mrf.mxu0 }
 0x19c   :  { %v2894_v38 = vpop.f32.mrf.mxu1  ;;  %v1944_v48 = vadd.f32 %v2892_v45, %v1904_v44 }
 0x1b5   :  { %v2912_v46 = vpop.f32.mrf.mxu0 }
 0x1b7   :  { %v2913_v47 = vpop.f32.mrf.mxu0 }
 0x1b8   :  { %v2914_v49 = vadd.f32 %v2913_v47, %v2912_v46 }
 0x1b9   :  { %v2915_v51 = vpop.f32.mrf.mxu0 }
 0x1ba   :  { %v1984_v52 = vadd.f32 %v2914_v49, %v1944_v48 }
 0x1bb   :  { %v2916_v53 = vpop.f32.mrf.mxu0 }
 0x1bc   :  { %v1996_v54 = vadd.f32 %v2641_v50, %v1984_v52 }
 0x1be   :  { %v1997_v55 = vmax.f32 %v1996_v54, 0.0 }
 0x1c0   :  { %v1998_v57 = vpack.c.bf16 %v1997_v55, %v1997_v55 }
 0x1c2   :  { %2140 = vmatmul.mubr.bf16.vlgmr.msra.gmra.mxu1 %v1998_v57 }
 0x1c3   :  { %2957 = vmatpush3.bf16.msra.mxu1 %v3190_v56  ;;  %2972 = vmatprep.mubr.msk.bf16.mxu1 %vm3317_vm0, %v3316_v5 }
 0x1c4   :  { %2958 = vmatprep.subr.bf16.mxu1 %v3316_v5 }
 0x1c7   :  { %2959 = vmatpush3.bf16.msra.mxu1 %v3192_v58 }
 0x1c8   :  { %2960 = vmatprep.subr.bf16.mxu1 %v3316_v5 }
 0x1cb   :  { %2961 = vmatpush3.bf16.msra.mxu1 %v3194_v59 }
 0x1cc   :  { %2962 = vmatprep.subr.bf16.mxu1 %v3316_v5 }
 0x1cf   :  { %2963 = vmatpush3.bf16.msra.mxu1 %v3196_v60 }
 0x1d0   :  { %2964 = vmatprep.subr.bf16.mxu1 %v3316_v5 }
 0x1d3   :  { %2965 = vmatpush3.bf16.msra.mxu1 %v3198_v61  ;;  %v2410_v61 = vand.u32 127, %v2017_v3 }
 0x1d4   :  { %2966 = vmatprep.subr.bf16.mxu1 %v3316_v5 }
 0x1d7   :  { %2967 = vmatpush3.bf16.msra.mxu1 %v3200_v62 }
 0x1d8   :  { %2968 = vmatprep.subr.bf16.mxu1 %v3316_v5 }
 0x1db   :  { %2969 = vmatpush3.bf16.msra.mxu1 %v3202_v0 }
 0x1dc   :  { %2970 = vmatprep.subr.bf16.mxu1 %v3316_v5 }
 0x1df   :  { %2971 = vmatpush3.bf16.msra.mxu1 %v3204_v2 }
 0x282   :  { %v2141_v11 = vpop.f32.mrf.mxu1 }
 0x283   :  { %v2142_v12 = vadd.f32 %v2141_v11, %v2020_v9  ;;  %v2443_v9 = vld [vmem:[%s3549_s2] sm:$0xff] }
 0x284   :  { %v2143_v13 = vpop.f32.mrf.mxu1 }
 0x285   :  { %v2148_v14 = vmax.f32 %v2142_v12, 0.0  ;;  %v2144_v15 = vadd.f32 %v2143_v13, %v2024_v10 }
 0x286   :  { %v2145_v16 = vpop.f32.mrf.mxu1 }
 0x287   :  { %v2150_v17 = vpack.c.bf16 %v2148_v14, %v2148_v14  ;;  %v2149_v18 = vmax.f32 %v2144_v15, 0.0 }
 0x288   :  { %v2146_v5 = vpop.f32.mrf.mxu1 }
 0x289   :  { %v2262_v19 = vpack.c.bf16 %v2149_v18, %v2149_v18  ;;  %2953 = vmatmul.mubr.bf16.vlgmr.msra.gmra.mxu0 %v2150_v17 }
 0x28b   :  { %2973 = vmatmul.mubr.bf16.vlgmr.msra.gmra.mxu1 %v2262_v19 }
 0x349   :  { %v2256_v21 = vpop.f32.mrf.mxu0 }
 0x34a   :  { %v2257_v23 = vadd.f32 %v2658_v20, %v2256_v21 }
 0x34b   :  { %v2954_v24 = vpop.f32.mrf.mxu0  ;;  %v2368_v25 = vpop.f32.mrf.mxu1 }
 0x34c   :  { %v2369_v26 = vadd.f32 %v2667_v22, %v2368_v25  ;;  %v2375_v27 = vsel %vm2374_vm1, %v2257_v23, -inf }
 0x34d   :  { %v2974_v28 = vpop.f32.mrf.mxu1  ;;  %2376 = vmax.xlane.f32.xlu0 %v2375_v27  ;;  %v2259_v29 = vpop.f32.mrf.mxu0 }
 0x34e   :  { %v2386_v32 = vsel %vm2374_vm1, %v2369_v26, -inf }
 0x34f   :  { %v2955_v30 = vpop.f32.mrf.mxu0  ;;  %v2371_v31 = vpop.f32.mrf.mxu1 }
 0x351   :  { %v2975_v33 = vpop.f32.mrf.mxu1  ;;  %2387 = vmax.xlane.f32.xlu0 %v2386_v32 }
 0x3d6   :  { %v2377_v34 = vpop.xlane.xlu0 %2376 }
 0x3d7   :  { %v2378_v35 = vsub.f32 %v2257_v23, %v2377_v34 }
 0x3d9   :  { %v2379_v36 = vmul.f32 1.442695, %v2378_v35 }
 0x3da   :  { %v2388_v37 = vpop.xlane.xlu0 %2387 }
 0x3db   :  { %3205 = vpow2.f32 %v2379_v36  ;;  %v2389_v38 = vsub.f32 %v2369_v26, %v2388_v37 }
 0x3dd   :  { %v2390_v39 = vmul.f32 1.442695, %v2389_v38 }
 0x3df   :  { %3207 = vpow2.f32 %v2390_v39 }
 0x3e8   :  { %v3206_v40 = vpop.eup %3205 }
 0x3e9   :  { %v2381_v41 = vsel %vm2374_vm1, %v3206_v40, 0.0 }
 0x3ea   :  { %2382 = vadd.xlane.f32.xlu1 %v2381_v41 }
 0x3ec   :  { %v3208_v42 = vpop.eup %3207 }
 0x3ed   :  { %v2392_v43 = vsel %vm2374_vm1, %v3208_v42, 0.0 }
 0x3ee   :  { %2393 = vadd.xlane.f32.xlu1 %v2392_v43 }
 0x473   :  { %v2383_v44 = vpop.xlane.xlu1 %2382 }
 0x474   :  { %3209 = vrcp.f32 %v2383_v44 }
 0x477   :  { %v2394_v45 = vpop.xlane.xlu1 %2393 }
 0x478   :  { %3211 = vrcp.f32 %v2394_v45 }
 0x481   :  { %v3210_v46 = vpop.eup %3209 }
 0x482   :  { %v2385_v48 = vmul.f32 %v3210_v46, %v3206_v40 }
 0x485   :  { %v3212_v47 = vpop.eup %3211 }
 0x486   :  { %v2396_v49 = vmul.f32 %v3212_v47, %v3208_v42 }
 0x488   :  { %v2397_v50 = vadd.f32 %v2396_v49, %v2385_v48 }
 0x48a   :  { %v2398_v51 = vsel %vm2374_vm1, %v2397_v50, -inf }
 0x48b   :  { %2399 = vmax.xlane.f32.xlu0 %v2398_v51 }
 0x514   :  { %v2400_v52 = vpop.xlane.xlu0 %2399 }
 0x515   :  { %v2401_v53 = vsub.f32 %v2397_v50, %v2400_v52 }
 0x517   :  { %v2402_v54 = vmul.f32 1.442695, %v2401_v53 }
 0x519   :  { %3213 = vpow2.f32 %v2402_v54 }
 0x526   :  { %v3214_v55 = vpop.eup %3213 }
 0x527   :  { %v2404_v56 = vsel %vm2374_vm1, %v3214_v55, 0.0 }
 0x528   :  { %2405 = vadd.xlane.f32.xlu1 %v2404_v56 }
 0x5b1   :  { %v2406_v57 = vpop.xlane.xlu1 %2405 }
 0x5b2   :  { %3215 = vrcp.f32 %v2406_v57 }
 0x5bf   :  { %v3216_v58 = vpop.eup %3215 }
 0x5c0   :  { %v2408_v59 = vmul.f32 %v3216_v58, %v3214_v55 }
 0x5c2   :  { %v2411_v60 = vsel %vm2374_vm1, %v2408_v59, -inf }
 0x5c3   :  { %2412 = vmax.xlane.f32.xlu0 %v2411_v60 }
 0x64c   :  { %v2413_v62 = vpop.xlane.xlu0 %2412 }
 0x64d   :  { %vm2414_vm2 = vcmp.eq.f32.partialorder %v2408_v59, %v2413_v62  ;;  %v2433_v63 = vsub.f32 %v2408_v59, %v2413_v62 }
 0x64e   :  { %v2415_v0 = vsel %vm2414_vm2, %v2410_v61, 3 }
 0x64f   :  { %v2434_v1 = vmul.f32 1.442695, %v2433_v63  ;;  %v2416_v2 = vsel %vm2374_vm1, %v2415_v0, 2147483647 }
 0x650   :  { %v2418_v4 = vshra.s32 %v2416_v2, 16  ;;  %v2417_v3 = vand.u32 65535, %v2416_v2 }
 0x651   :  { %3217 = vpow2.f32 %v2434_v1 }
 0x652   :  { %v2420_v6 = vcvt.s32.f32 %v2418_v4  ;;  %v2419_v11 = vcvt.s32.f32 %v2417_v3 }
 0x654   :  { %2421 = vmin.xlane.f32.xlu0 %v2420_v6 }
 0x65e   :  { %v3218_v7 = vpop.eup %3217 }
 0x65f   :  { %v2436_v8 = vsel %vm2374_vm1, %v3218_v7, 0.0 }
 0x660   :  { %2437 = vadd.xlane.f32.xlu1 %v2436_v8 }
 0x671   :  { %2445 = vperm.xlu1 %2987, %v2443_v9  }
 0x6dd   :  { %v2422_v10 = vpop.xlane.xlu0 %2421 }
 0x6de   :  { %vm2423_vm3 = vcmp.eq.f32.partialorder %v2420_v6, %v2422_v10  ;;  %v2428_v21 = vcvt.f32.s32 %v2422_v10 }
 0x6df   :  { %v2424_v12 = vsel %vm2423_vm3, %v2419_v11, inf }
 0x6e0   :  { %2425 = vmin.xlane.f32.xlu0 %v2424_v12  ;;  %v2429_v23 = vshll.u32 %v2428_v21, 16 }
 0x6e9   :  { %v2438_v13 = vpop.xlane.xlu1 %2437 }
 0x6ea   :  { %3219 = vlog2.f32 %v2438_v13 }
 0x6ed   :  { %v2446_v16 = vpop.permute.xlu1 %2445 }
 0x6ee   :  { %vm2447_vm4 = vcmp.eq.s32.totalorder %v2410_v61, %v2446_v16 }
 0x6f7   :  { %v3220_v14 = vpop.eup %3219 }
 0x6f8   :  { %v2440_v15 = vmul.f32 0.6931472, %v3220_v14 }
 0x6fa   :  { %v2441_v17 = vadd.f32 %v2440_v15, %v2413_v62 }
 0x6fc   :  { %v2442_v18 = vsub.f32 %v2408_v59, %v2441_v17 }
 0x6fe   :  { %v2448_v5 = vsub.f32 0.0, %v2442_v18 }
 0x700   :  { %v2449_v19 = vsel %vm2447_vm4, %v2448_v5, 0.0 }
 0x701   :  { %v2450_v20 = vsel %vm2374_vm1, %v2449_v19, 0.0 }
 0x702   :  { %2451 = vadd.xlane.f32.xlu0 %v2450_v20 }
 0x769   :  { %v2426_v22 = vpop.xlane.xlu0 %2425 }
 0x76a   :  { %v2427_v24 = vcvt.f32.s32 %v2426_v22 }
 0x76c   :  { %v2430_v25 = vadd.s32 %v2429_v23, %v2427_v24 }
 0x76e   :  { %2432 = vst.msk [vmem:[%s3559_s12] sm:$0xff] %vm2431_vm5, %v2430_v25 }
 0x78b   :  { %v2452_v26 = vpop.xlane.xlu0 %2451 }
 0x78c   :  { %2453 = vst.msk [vmem:[%s3560_s13] sm:$0xff] %vm2431_vm5, %v2452_v26 }
 0x78d   :  { %2462 = vsyncpa [#allocation3], 1 }
 0x78e   :  { %2463 = vsyncpa [#allocation5], 1 }
 0x78f   :  { %2464 = vsyncpa [#allocation8], 1 }

</bundles_post_ra>
